<compile_context>
chip_gen: v5e
topology: v5e:2x2
jax: 0.10.0
libtpu: 0.0.40
codegen_flags: <defaults>
</compile_context>

<pallas_src>
import jax
import jax.numpy as jnp
from jax.experimental import pallas as pl
from jax.experimental.pallas import tpu as pltpu


# ------------------------------ fused Pallas kernel ------------------------------

def _fused_forward_kernel(x3_ref, w1_ref, b1_ref, w2_ref, b2_ref,
                          w3_ref, b3_ref, w4_ref, b4_ref, o_ref,
                          pool_ref, flat_ref):
    B, _ = o_ref.shape
    C1 = w1_ref.shape[1]
    C2 = w2_ref.shape[1]
    rows3 = x3_ref.shape[0]          # 3 * P * B, rows ordered (k = l % 3, p, b)
    PB = rows3 // 3                  # P * B pooled rows
    P = PB // B

    def mm(a, w):                    # bf16 MXU matmul with f32 accumulation
        return jnp.dot(a.astype(jnp.bfloat16), w, preferred_element_type=jnp.float32)

    # ---- Conv1D(C1, k=3, 'same') + ReLU: one fused matmul over the pre-built 3-tap window ----------
    y1 = jnp.maximum(mm(x3_ref[...], w1_ref[...]) + b1_ref[...], 0.0)          # [3*P*B, C1] f32

    # ---- MaxPool1D(pool=3, stride=3): rows are k-major, so pool = max of 3 contiguous slabs --------
    pooled = jnp.maximum(jnp.maximum(y1[0:PB, :], y1[PB:2 * PB, :]), y1[2 * PB:3 * PB, :])

    # ---- Conv1D(C2, k=3, 'same') + ReLU via a zero-padded scratch (static slices, no masks) --------
    pool_ref[...] = jnp.zeros(((P + 2) * B, C1), jnp.float32)
    pool_ref[B:(P + 1) * B, :] = pooled
    y2 = (mm(pool_ref[0:PB, :],              w2_ref[0:C1, :]) +
          mm(pool_ref[B:B + PB, :],          w2_ref[C1:2 * C1, :]) +
          mm(pool_ref[2 * B:2 * B + PB, :],  w2_ref[2 * C1:3 * C1, :]))
    y2 = jnp.maximum(y2 + b2_ref[...], 0.0)                                    # [P*B, C2] f32

    # ---- Flatten (Keras order: position-major, channel-minor) into one [B, P*C2] row per example --
    for p in range(P):
        flat_ref[:, p * C2:(p + 1) * C2] = y2[p * B:(p + 1) * B, :]

    # ---- BatchNorm(folded) + Dense(H) + ReLU: single full-contraction K = P*C2 matmul -------------
    h = jnp.maximum(mm(flat_ref[...], w3_ref[...]) + b3_ref[...], 0.0)         # [B, H] f32

    # ---- Dense(NCLS) + softmax ----------------------------------------------------------------------
    logits = mm(h, w4_ref[...]) + b4_ref[...]                                  # [B, NCLS] f32
    z = logits - jnp.max(logits, axis=-1, keepdims=True)
    e = jnp.exp(z)
    o_ref[...] = e / jnp.sum(e, axis=-1, keepdims=True)


def model2_fused(x3, w1, b1, w2, b2, w3, b3, w4, b4, *, batch):
    rows3, _ = x3.shape
    C1 = w1.shape[1]
    C2 = w2.shape[1]
    FLAT, H = w3.shape
    NCLS = w4.shape[1]
    PB = rows3 // 3
    P = PB // batch
    assert PB == P * batch and FLAT == P * C2

    def full(shape):
        return pl.BlockSpec(shape, lambda i: (0, 0))

    return pl.pallas_call(
        _fused_forward_kernel,
        out_shape=jax.ShapeDtypeStruct((batch, NCLS), jnp.float32),
        grid_spec=pltpu.PrefetchScalarGridSpec(
            num_scalar_prefetch=0,
            grid=(1,),
            in_specs=[full(x3.shape),
                      full(w1.shape), full(b1.shape),
                      full(w2.shape), full(b2.shape),
                      full(w3.shape), full(b3.shape),
                      full(w4.shape), full(b4.shape)],
            out_specs=full((batch, NCLS)),
            scratch_shapes=[pltpu.VMEM(((P + 2) * batch, C1), jnp.float32),  # zero-padded pooled
                            pltpu.VMEM((batch, P * C2), jnp.float32)],       # flattened features
        ),
        compiler_params=pltpu.CompilerParams(dimension_semantics=("arbitrary",)),
    )(x3, w1, b1, w2, b2, w3, b3, w4, b4)


# ------------------------------ params & JAX glue ------------------------------

def init_params(key):
    V, E = 2000, 32          # embedding: input_dim=2000, output_dim=32
    C1, C2 = 256, 32         # conv1 / conv2 filters (kernel size 3)
    L = 48                   # sequence length (multiple of pool size 3)
    P = L // 3
    FLAT = P * C2            # flattened features (512)
    H, NCLS = 256, 10
    ks = jax.random.split(key, 7)
    return dict(
        emb=0.05 * jax.random.normal(ks[0], (V, E), jnp.float32),
        w1=0.05 * jax.random.normal(ks[1], (3 * E, C1), jnp.float32),
        b1=jnp.zeros((C1,), jnp.float32),
        w2=0.05 * jax.random.normal(ks[2], (3 * C1, C2), jnp.float32),
        b2=jnp.zeros((C2,), jnp.float32),
        bn_gamma=1.0 + 0.1 * jax.random.normal(ks[3], (FLAT,), jnp.float32),
        bn_beta=0.1 * jax.random.normal(ks[4], (FLAT,), jnp.float32),
        bn_mean=jnp.zeros((FLAT,), jnp.float32),
        bn_var=jnp.ones((FLAT,), jnp.float32),
        w3=0.05 * jax.random.normal(ks[5], (FLAT, H), jnp.float32),
        b3=jnp.zeros((H,), jnp.float32),
        w4=0.05 * jax.random.normal(ks[6], (H, NCLS), jnp.float32),
        b4=jnp.zeros((NCLS,), jnp.float32),
    )


def prepare_params(params):
    """One-time, offline: fold inference BatchNorm into Dense(256), append the zero PAD row to the
    embedding table, and cast weights/embeddings to bf16."""
    eps = 1e-5
    scale = params["bn_gamma"] / jnp.sqrt(params["bn_var"] + eps)
    shift = params["bn_beta"] - params["bn_mean"] * scale
    w3f = params["w3"] * scale[:, None]
    b3f = params["b3"] + shift @ params["w3"]
    E = params["emb"].shape[1]
    emb_pad = jnp.concatenate([params["emb"], jnp.zeros((1, E), jnp.float32)], axis=0)
    bf16 = jnp.bfloat16
    return dict(
        emb=emb_pad.astype(bf16),                                     # [V+1, E], last row = PAD (zeros)
        w1=params["w1"].astype(bf16), b1=params["b1"].reshape(1, -1),
        w2=params["w2"].astype(bf16), b2=params["b2"].reshape(1, -1),
        w3=w3f.astype(bf16),          b3=b3f.reshape(1, -1),
        w4=params["w4"].astype(bf16), b4=params["b4"].reshape(1, -1),
    )


def model2_forward(prep, ids):
    B, L = ids.shape
    emb = prep["emb"]                    # [V+1, E] bf16; last row is the zero PAD row
    E = emb.shape[1]
    pad_id = emb.shape[0] - 1
    assert L % 3 == 0                    # see TODO(synk) above re: input_length=50
    P = L // 3

    # Build the conv1 3-tap gather indices. These are tiny int32 ops (<= 600 elements) that XLA
    # fuses; the only real XLA data op is the single embedding gather below.
    idsT = ids.T                                                        # [L, B]
    pad = jnp.full((1, B), pad_id, dtype=ids.dtype)
    ids_ext = jnp.concatenate([pad, idsT, pad], axis=0)                 # [L+2, B]
    win = jnp.stack([ids_ext[t:t + L, :] for t in range(3)], axis=-1)   # [L, B, 3]: tokens l-1, l, l+1
    # Row order (k = l % 3)-major, then p, then b, so MaxPool(3,3) is a max over 3 contiguous slabs.
    idx = jnp.transpose(win.reshape(P, 3, B, 3), (1, 0, 2, 3))          # [3, P, B, 3]
    # Embedding lookup emitting the conv1 window directly: [3*P*B, 3*E] bf16 (seq-major, batch-minor).
    x3 = jnp.take(emb, idx.reshape(-1), axis=0).reshape(3 * P * B, 3 * E)

    return model2_fused(x3,
                        prep["w1"], prep["b1"], prep["w2"], prep["b2"],
                        prep["w3"], prep["b3"], prep["w4"], prep["b4"],
                        batch=B)


if __name__ == "__main__":
    key = jax.random.PRNGKey(0)
    pkey, ikey = jax.random.split(key)
    params = init_params(pkey)
    prep = prepare_params(params)   # offline precompute (BN fold + PAD row + bf16 cast), outside the jit hot path

    B, L = 4, 48
    ids = jax.random.randint(ikey, (B, L), 0, 2000, dtype=jnp.int32)

    fwd = jax.jit(model2_forward)
    out = jax.block_until_ready(fwd(prep, ids))

    assert out.shape == (B, 10), out.shape
    assert bool(jnp.all(jnp.isfinite(out)))
    assert bool(jnp.allclose(jnp.sum(out, axis=-1), 1.0, atol=1e-4))
    print("KERNEL_OK")
</pallas_src>

<mosaic_0001>
module attributes {stable_mosaic.version = 11 : i64} {
  func.func @_fused_forward_kernel(%arg0: i32, %arg1: memref<192x96xbf16, #tpu.memory_space<vmem>>, %arg2: memref<96x256xbf16, #tpu.memory_space<vmem>>, %arg3: memref<1x256xf32, #tpu.memory_space<vmem>>, %arg4: memref<768x32xbf16, #tpu.memory_space<vmem>>, %arg5: memref<1x32xf32, #tpu.memory_space<vmem>>, %arg6: memref<512x256xbf16, #tpu.memory_space<vmem>>, %arg7: memref<1x256xf32, #tpu.memory_space<vmem>>, %arg8: memref<256x10xbf16, #tpu.memory_space<vmem>>, %arg9: memref<1x10xf32, #tpu.memory_space<vmem>>, %arg10: memref<4x10xf32, #tpu.memory_space<vmem>>, %arg11: memref<72x256xf32, #tpu.memory_space<vmem>>, %arg12: memref<4x512xf32, #tpu.memory_space<vmem>>) attributes {dimension_semantics = [#tpu.dimension_semantics<arbitrary>], iteration_bounds = array<i64: 1>, scalar_prefetch = 0 : i64, scratch_operands = 2 : i64, tpu.core_type = #tpu.core_type<tc>, window_params = [{pipeline_mode = #tpu.pipeline_mode<synchronous>, transform_indices = @transform_0, window_bounds = array<i64: 192, 96>}, {pipeline_mode = #tpu.pipeline_mode<synchronous>, transform_indices = @transform_1, window_bounds = array<i64: 96, 256>}, {pipeline_mode = #tpu.pipeline_mode<synchronous>, transform_indices = @transform_2, window_bounds = array<i64: 1, 256>}, {pipeline_mode = #tpu.pipeline_mode<synchronous>, transform_indices = @transform_3, window_bounds = array<i64: 768, 32>}, {pipeline_mode = #tpu.pipeline_mode<synchronous>, transform_indices = @transform_4, window_bounds = array<i64: 1, 32>}, {pipeline_mode = #tpu.pipeline_mode<synchronous>, transform_indices = @transform_5, window_bounds = array<i64: 512, 256>}, {pipeline_mode = #tpu.pipeline_mode<synchronous>, transform_indices = @transform_6, window_bounds = array<i64: 1, 256>}, {pipeline_mode = #tpu.pipeline_mode<synchronous>, transform_indices = @transform_7, window_bounds = array<i64: 256, 10>}, {pipeline_mode = #tpu.pipeline_mode<synchronous>, transform_indices = @transform_8, window_bounds = array<i64: 1, 10>}, {pipeline_mode = #tpu.pipeline_mode<synchronous>, transform_indices = @transform_9, window_bounds = array<i64: 4, 10>}]} {
    %c0 = arith.constant 0 : index
    %c0_0 = arith.constant 0 : index
    %0 = vector.load %arg1[%c0, %c0_0] : memref<192x96xbf16, #tpu.memory_space<vmem>>, vector<192x96xbf16>
    %c0_1 = arith.constant 0 : index
    %c0_2 = arith.constant 0 : index
    %1 = vector.load %arg2[%c0_1, %c0_2] : memref<96x256xbf16, #tpu.memory_space<vmem>>, vector<96x256xbf16>
    %cst = arith.constant dense<0.000000e+00> : vector<192x256xf32>
    %2 = tpu.matmul %0, %1, %cst {dimension_numbers = #tpu.dot_dimension_numbers<[1], [0], [0], [1], [0, 0, 1, 1], [], []>} : vector<192x96xbf16>, vector<96x256xbf16>, vector<192x256xf32> -> vector<192x256xf32>
    %c0_3 = arith.constant 0 : index
    %c0_4 = arith.constant 0 : index
    %3 = vector.load %arg3[%c0_3, %c0_4] : memref<1x256xf32, #tpu.memory_space<vmem>>, vector<1x256xf32>
    %4 = vector.broadcast %3 : vector<1x256xf32> to vector<192x256xf32>
    %5 = arith.addf %2, %4 : vector<192x256xf32>
    %cst_5 = arith.constant 0.000000e+00 : f32
    %6 = vector.broadcast %cst_5 : f32 to vector<192x256xf32>
    %7 = arith.maximumf %5, %6 : vector<192x256xf32>
    %8 = vector.extract_strided_slice %7 {offsets = [0, 0], sizes = [64, 256], strides = [1, 1]} : vector<192x256xf32> to vector<64x256xf32>
    %9 = vector.extract_strided_slice %7 {offsets = [64, 0], sizes = [64, 256], strides = [1, 1]} : vector<192x256xf32> to vector<64x256xf32>
    %10 = arith.maximumf %8, %9 : vector<64x256xf32>
    %11 = vector.extract_strided_slice %7 {offsets = [128, 0], sizes = [64, 256], strides = [1, 1]} : vector<192x256xf32> to vector<64x256xf32>
    %12 = arith.maximumf %10, %11 : vector<64x256xf32>
    %cst_6 = arith.constant 0.000000e+00 : f32
    %13 = vector.broadcast %cst_6 : f32 to vector<72x256xf32>
    %c0_7 = arith.constant 0 : index
    %c0_8 = arith.constant 0 : index
    %14 = vector.load %arg11[%c0_7, %c0_8] : memref<72x256xf32, #tpu.memory_space<vmem>>, vector<72x256xf32>
    tpu.vector_store %arg11[%c0_7, %c0_8], %13 {strides = array<i32>} : memref<72x256xf32, #tpu.memory_space<vmem>>, vector<72x256xf32>,
    %c4 = arith.constant 4 : index
    %c0_9 = arith.constant 0 : index
    %15 = vector.load %arg11[%c4, %c0_9] : memref<72x256xf32, #tpu.memory_space<vmem>>, vector<64x256xf32>
    tpu.vector_store %arg11[%c4, %c0_9], %12 {strides = array<i32>} : memref<72x256xf32, #tpu.memory_space<vmem>>, vector<64x256xf32>,
    %c0_10 = arith.constant 0 : index
    %c0_11 = arith.constant 0 : index
    %16 = vector.load %arg11[%c0_10, %c0_11] : memref<72x256xf32, #tpu.memory_space<vmem>>, vector<64x256xf32>
    %c0_12 = arith.constant 0 : index
    %c0_13 = arith.constant 0 : index
    %17 = vector.load %arg4[%c0_12, %c0_13] : memref<768x32xbf16, #tpu.memory_space<vmem>>, vector<256x32xbf16>
    %18 = arith.truncf %16 : vector<64x256xf32> to vector<64x256xbf16>
    %cst_14 = arith.constant dense<0.000000e+00> : vector<64x32xf32>
    %19 = tpu.matmul %18, %17, %cst_14 {dimension_numbers = #tpu.dot_dimension_numbers<[1], [0], [0], [1], [0, 0, 1, 1], [], []>} : vector<64x256xbf16>, vector<256x32xbf16>, vector<64x32xf32> -> vector<64x32xf32>
    %c4_15 = arith.constant 4 : index
    %c0_16 = arith.constant 0 : index
    %20 = vector.load %arg11[%c4_15, %c0_16] : memref<72x256xf32, #tpu.memory_space<vmem>>, vector<64x256xf32>
    %c256 = arith.constant 256 : index
    %c0_17 = arith.constant 0 : index
    %21 = vector.load %arg4[%c256, %c0_17] : memref<768x32xbf16, #tpu.memory_space<vmem>>, vector<256x32xbf16>
    %22 = arith.truncf %20 : vector<64x256xf32> to vector<64x256xbf16>
    %cst_18 = arith.constant dense<0.000000e+00> : vector<64x32xf32>
    %23 = tpu.matmul %22, %21, %cst_18 {dimension_numbers = #tpu.dot_dimension_numbers<[1], [0], [0], [1], [0, 0, 1, 1], [], []>} : vector<64x256xbf16>, vector<256x32xbf16>, vector<64x32xf32> -> vector<64x32xf32>
    %24 = arith.addf %19, %23 : vector<64x32xf32>
    %c8 = arith.constant 8 : index
    %c0_19 = arith.constant 0 : index
    %25 = vector.load %arg11[%c8, %c0_19] : memref<72x256xf32, #tpu.memory_space<vmem>>, vector<64x256xf32>
    %c512 = arith.constant 512 : index
    %c0_20 = arith.constant 0 : index
    %26 = vector.load %arg4[%c512, %c0_20] : memref<768x32xbf16, #tpu.memory_space<vmem>>, vector<256x32xbf16>
    %27 = arith.truncf %25 : vector<64x256xf32> to vector<64x256xbf16>
    %cst_21 = arith.constant dense<0.000000e+00> : vector<64x32xf32>
    %28 = tpu.matmul %27, %26, %cst_21 {dimension_numbers = #tpu.dot_dimension_numbers<[1], [0], [0], [1], [0, 0, 1, 1], [], []>} : vector<64x256xbf16>, vector<256x32xbf16>, vector<64x32xf32> -> vector<64x32xf32>
    %29 = arith.addf %24, %28 : vector<64x32xf32>
    %c0_22 = arith.constant 0 : index
    %c0_23 = arith.constant 0 : index
    %30 = vector.load %arg5[%c0_22, %c0_23] : memref<1x32xf32, #tpu.memory_space<vmem>>, vector<1x32xf32>
    %31 = vector.broadcast %30 : vector<1x32xf32> to vector<64x32xf32>
    %32 = arith.addf %29, %31 : vector<64x32xf32>
    %cst_24 = arith.constant 0.000000e+00 : f32
    %33 = vector.broadcast %cst_24 : f32 to vector<64x32xf32>
    %34 = arith.maximumf %32, %33 : vector<64x32xf32>
    %35 = vector.extract_strided_slice %34 {offsets = [0, 0], sizes = [4, 32], strides = [1, 1]} : vector<64x32xf32> to vector<4x32xf32>
    %c0_25 = arith.constant 0 : index
    %c0_26 = arith.constant 0 : index
    %36 = vector.load %arg12[%c0_25, %c0_26] : memref<4x512xf32, #tpu.memory_space<vmem>>, vector<4x32xf32>
    tpu.vector_store %arg12[%c0_25, %c0_26], %35 {strides = array<i32>} : memref<4x512xf32, #tpu.memory_space<vmem>>, vector<4x32xf32>,
    %37 = vector.extract_strided_slice %34 {offsets = [4, 0], sizes = [4, 32], strides = [1, 1]} : vector<64x32xf32> to vector<4x32xf32>
    %c0_27 = arith.constant 0 : index
    %c32 = arith.constant 32 : index
    %38 = vector.load %arg12[%c0_27, %c32] : memref<4x512xf32, #tpu.memory_space<vmem>>, vector<4x32xf32>
    tpu.vector_store %arg12[%c0_27, %c32], %37 {strides = array<i32>} : memref<4x512xf32, #tpu.memory_space<vmem>>, vector<4x32xf32>,
    %39 = vector.extract_strided_slice %34 {offsets = [8, 0], sizes = [4, 32], strides = [1, 1]} : vector<64x32xf32> to vector<4x32xf32>
    %c0_28 = arith.constant 0 : index
    %c64 = arith.constant 64 : index
    %40 = vector.load %arg12[%c0_28, %c64] : memref<4x512xf32, #tpu.memory_space<vmem>>, vector<4x32xf32>
    tpu.vector_store %arg12[%c0_28, %c64], %39 {strides = array<i32>} : memref<4x512xf32, #tpu.memory_space<vmem>>, vector<4x32xf32>,
    %41 = vector.extract_strided_slice %34 {offsets = [12, 0], sizes = [4, 32], strides = [1, 1]} : vector<64x32xf32> to vector<4x32xf32>
    %c0_29 = arith.constant 0 : index
    %c96 = arith.constant 96 : index
    %42 = vector.load %arg12[%c0_29, %c96] : memref<4x512xf32, #tpu.memory_space<vmem>>, vector<4x32xf32>
    tpu.vector_store %arg12[%c0_29, %c96], %41 {strides = array<i32>} : memref<4x512xf32, #tpu.memory_space<vmem>>, vector<4x32xf32>,
    %43 = vector.extract_strided_slice %34 {offsets = [16, 0], sizes = [4, 32], strides = [1, 1]} : vector<64x32xf32> to vector<4x32xf32>
    %c0_30 = arith.constant 0 : index
    %c128 = arith.constant 128 : index
    %44 = vector.load %arg12[%c0_30, %c128] : memref<4x512xf32, #tpu.memory_space<vmem>>, vector<4x32xf32>
    tpu.vector_store %arg12[%c0_30, %c128], %43 {strides = array<i32>} : memref<4x512xf32, #tpu.memory_space<vmem>>, vector<4x32xf32>,
    %45 = vector.extract_strided_slice %34 {offsets = [20, 0], sizes = [4, 32], strides = [1, 1]} : vector<64x32xf32> to vector<4x32xf32>
    %c0_31 = arith.constant 0 : index
    %c160 = arith.constant 160 : index
    %46 = vector.load %arg12[%c0_31, %c160] : memref<4x512xf32, #tpu.memory_space<vmem>>, vector<4x32xf32>
    tpu.vector_store %arg12[%c0_31, %c160], %45 {strides = array<i32>} : memref<4x512xf32, #tpu.memory_space<vmem>>, vector<4x32xf32>,
    %47 = vector.extract_strided_slice %34 {offsets = [24, 0], sizes = [4, 32], strides = [1, 1]} : vector<64x32xf32> to vector<4x32xf32>
    %c0_32 = arith.constant 0 : index
    %c192 = arith.constant 192 : index
    %48 = vector.load %arg12[%c0_32, %c192] : memref<4x512xf32, #tpu.memory_space<vmem>>, vector<4x32xf32>
    tpu.vector_store %arg12[%c0_32, %c192], %47 {strides = array<i32>} : memref<4x512xf32, #tpu.memory_space<vmem>>, vector<4x32xf32>,
    %49 = vector.extract_strided_slice %34 {offsets = [28, 0], sizes = [4, 32], strides = [1, 1]} : vector<64x32xf32> to vector<4x32xf32>
    %c0_33 = arith.constant 0 : index
    %c224 = arith.constant 224 : index
    %50 = vector.load %arg12[%c0_33, %c224] : memref<4x512xf32, #tpu.memory_space<vmem>>, vector<4x32xf32>
    tpu.vector_store %arg12[%c0_33, %c224], %49 {strides = array<i32>} : memref<4x512xf32, #tpu.memory_space<vmem>>, vector<4x32xf32>,
    %51 = vector.extract_strided_slice %34 {offsets = [32, 0], sizes = [4, 32], strides = [1, 1]} : vector<64x32xf32> to vector<4x32xf32>
    %c0_34 = arith.constant 0 : index
    %c256_35 = arith.constant 256 : index
    %52 = vector.load %arg12[%c0_34, %c256_35] : memref<4x512xf32, #tpu.memory_space<vmem>>, vector<4x32xf32>
    tpu.vector_store %arg12[%c0_34, %c256_35], %51 {strides = array<i32>} : memref<4x512xf32, #tpu.memory_space<vmem>>, vector<4x32xf32>,
    %53 = vector.extract_strided_slice %34 {offsets = [36, 0], sizes = [4, 32], strides = [1, 1]} : vector<64x32xf32> to vector<4x32xf32>
    %c0_36 = arith.constant 0 : index
    %c288 = arith.constant 288 : index
    %54 = vector.load %arg12[%c0_36, %c288] : memref<4x512xf32, #tpu.memory_space<vmem>>, vector<4x32xf32>
    tpu.vector_store %arg12[%c0_36, %c288], %53 {strides = array<i32>} : memref<4x512xf32, #tpu.memory_space<vmem>>, vector<4x32xf32>,
    %55 = vector.extract_strided_slice %34 {offsets = [40, 0], sizes = [4, 32], strides = [1, 1]} : vector<64x32xf32> to vector<4x32xf32>
    %c0_37 = arith.constant 0 : index
    %c320 = arith.constant 320 : index
    %56 = vector.load %arg12[%c0_37, %c320] : memref<4x512xf32, #tpu.memory_space<vmem>>, vector<4x32xf32>
    tpu.vector_store %arg12[%c0_37, %c320], %55 {strides = array<i32>} : memref<4x512xf32, #tpu.memory_space<vmem>>, vector<4x32xf32>,
    %57 = vector.extract_strided_slice %34 {offsets = [44, 0], sizes = [4, 32], strides = [1, 1]} : vector<64x32xf32> to vector<4x32xf32>
    %c0_38 = arith.constant 0 : index
    %c352 = arith.constant 352 : index
    %58 = vector.load %arg12[%c0_38, %c352] : memref<4x512xf32, #tpu.memory_space<vmem>>, vector<4x32xf32>
    tpu.vector_store %arg12[%c0_38, %c352], %57 {strides = array<i32>} : memref<4x512xf32, #tpu.memory_space<vmem>>, vector<4x32xf32>,
    %59 = vector.extract_strided_slice %34 {offsets = [48, 0], sizes = [4, 32], strides = [1, 1]} : vector<64x32xf32> to vector<4x32xf32>
    %c0_39 = arith.constant 0 : index
    %c384 = arith.constant 384 : index
    %60 = vector.load %arg12[%c0_39, %c384] : memref<4x512xf32, #tpu.memory_space<vmem>>, vector<4x32xf32>
    tpu.vector_store %arg12[%c0_39, %c384], %59 {strides = array<i32>} : memref<4x512xf32, #tpu.memory_space<vmem>>, vector<4x32xf32>,
    %61 = vector.extract_strided_slice %34 {offsets = [52, 0], sizes = [4, 32], strides = [1, 1]} : vector<64x32xf32> to vector<4x32xf32>
    %c0_40 = arith.constant 0 : index
    %c416 = arith.constant 416 : index
    %62 = vector.load %arg12[%c0_40, %c416] : memref<4x512xf32, #tpu.memory_space<vmem>>, vector<4x32xf32>
    tpu.vector_store %arg12[%c0_40, %c416], %61 {strides = array<i32>} : memref<4x512xf32, #tpu.memory_space<vmem>>, vector<4x32xf32>,
    %63 = vector.extract_strided_slice %34 {offsets = [56, 0], sizes = [4, 32], strides = [1, 1]} : vector<64x32xf32> to vector<4x32xf32>
    %c0_41 = arith.constant 0 : index
    %c448 = arith.constant 448 : index
    %64 = vector.load %arg12[%c0_41, %c448] : memref<4x512xf32, #tpu.memory_space<vmem>>, vector<4x32xf32>
    tpu.vector_store %arg12[%c0_41, %c448], %63 {strides = array<i32>} : memref<4x512xf32, #tpu.memory_space<vmem>>, vector<4x32xf32>,
    %65 = vector.extract_strided_slice %34 {offsets = [60, 0], sizes = [4, 32], strides = [1, 1]} : vector<64x32xf32> to vector<4x32xf32>
    %c0_42 = arith.constant 0 : index
    %c480 = arith.constant 480 : index
    %66 = vector.load %arg12[%c0_42, %c480] : memref<4x512xf32, #tpu.memory_space<vmem>>, vector<4x32xf32>
    tpu.vector_store %arg12[%c0_42, %c480], %65 {strides = array<i32>} : memref<4x512xf32, #tpu.memory_space<vmem>>, vector<4x32xf32>,
    %c0_43 = arith.constant 0 : index
    %c0_44 = arith.constant 0 : index
    %67 = vector.load %arg12[%c0_43, %c0_44] : memref<4x512xf32, #tpu.memory_space<vmem>>, vector<4x512xf32>
    %c0_45 = arith.constant 0 : index
    %c0_46 = arith.constant 0 : index
    %68 = vector.load %arg6[%c0_45, %c0_46] : memref<512x256xbf16, #tpu.memory_space<vmem>>, vector<512x256xbf16>
    %69 = arith.truncf %67 : vector<4x512xf32> to vector<4x512xbf16>
    %cst_47 = arith.constant dense<0.000000e+00> : vector<4x256xf32>
    %70 = tpu.matmul %69, %68, %cst_47 {dimension_numbers = #tpu.dot_dimension_numbers<[1], [0], [0], [1], [0, 0, 1, 1], [], []>} : vector<4x512xbf16>, vector<512x256xbf16>, vector<4x256xf32> -> vector<4x256xf32>
    %c0_48 = arith.constant 0 : index
    %c0_49 = arith.constant 0 : index
    %71 = vector.load %arg7[%c0_48, %c0_49] : memref<1x256xf32, #tpu.memory_space<vmem>>, vector<1x256xf32>
    %72 = vector.broadcast %71 : vector<1x256xf32> to vector<4x256xf32>
    %73 = arith.addf %70, %72 : vector<4x256xf32>
    %cst_50 = arith.constant 0.000000e+00 : f32
    %74 = vector.broadcast %cst_50 : f32 to vector<4x256xf32>
    %75 = arith.maximumf %73, %74 : vector<4x256xf32>
    %c0_51 = arith.constant 0 : index
    %c0_52 = arith.constant 0 : index
    %76 = vector.load %arg8[%c0_51, %c0_52] : memref<256x10xbf16, #tpu.memory_space<vmem>>, vector<256x10xbf16>
    %77 = arith.truncf %75 : vector<4x256xf32> to vector<4x256xbf16>
    %cst_53 = arith.constant dense<0.000000e+00> : vector<4x10xf32>
    %78 = tpu.matmul %77, %76, %cst_53 {dimension_numbers = #tpu.dot_dimension_numbers<[1], [0], [0], [1], [0, 0, 1, 1], [], []>} : vector<4x256xbf16>, vector<256x10xbf16>, vector<4x10xf32> -> vector<4x10xf32>
    %c0_54 = arith.constant 0 : index
    %c0_55 = arith.constant 0 : index
    %79 = vector.load %arg9[%c0_54, %c0_55] : memref<1x10xf32, #tpu.memory_space<vmem>>, vector<1x10xf32>
    %80 = vector.broadcast %79 : vector<1x10xf32> to vector<4x10xf32>
    %81 = arith.addf %78, %80 : vector<4x10xf32>
    %cst_56 = arith.constant dense<0xFF800000> : vector<4xf32>
    %82 = vector.multi_reduction <maximumf>, %81, %cst_56 [1] : vector<4x10xf32> to vector<4xf32>
    %83 = vector.shape_cast %82 : vector<4xf32> to vector<4x1xf32>
    %84 = vector.broadcast %83 : vector<4x1xf32> to vector<4x10xf32>
    %85 = arith.subf %81, %84 : vector<4x10xf32>
    %86 = math.exp %85 : vector<4x10xf32>
    %cst_57 = arith.constant dense<0.000000e+00> : vector<4xf32>
    %87 = vector.multi_reduction <add>, %86, %cst_57 [1] : vector<4x10xf32> to vector<4xf32>
    %88 = vector.shape_cast %87 : vector<4xf32> to vector<4x1xf32>
    %89 = vector.broadcast %88 : vector<4x1xf32> to vector<4x10xf32>
    %90 = arith.divf %86, %89 : vector<4x10xf32>
    %c0_58 = arith.constant 0 : index
    %c0_59 = arith.constant 0 : index
    %91 = vector.load %arg10[%c0_58, %c0_59] : memref<4x10xf32, #tpu.memory_space<vmem>>, vector<4x10xf32>
    tpu.vector_store %arg10[%c0_58, %c0_59], %90 {strides = array<i32>} : memref<4x10xf32, #tpu.memory_space<vmem>>, vector<4x10xf32>,
    return
  }
  func.func @transform_0(%arg0: i32) -> (i32, i32) {
    %c0_i32 = arith.constant 0 : i32
    %c0_i32_0 = arith.constant 0 : i32
    %c0_i32_1 = arith.constant 0 : i32
    return %c0_i32, %c0_i32_0 : i32, i32
  }
  func.func @transform_1(%arg0: i32) -> (i32, i32) {
    %c0_i32 = arith.constant 0 : i32
    %c0_i32_0 = arith.constant 0 : i32
    %c0_i32_1 = arith.constant 0 : i32
    return %c0_i32, %c0_i32_0 : i32, i32
  }
  func.func @transform_2(%arg0: i32) -> (i32, i32) {
    %c0_i32 = arith.constant 0 : i32
    %c0_i32_0 = arith.constant 0 : i32
    %c0_i32_1 = arith.constant 0 : i32
    return %c0_i32, %c0_i32_0 : i32, i32
  }
  func.func @transform_3(%arg0: i32) -> (i32, i32) {
    %c0_i32 = arith.constant 0 : i32
    %c0_i32_0 = arith.constant 0 : i32
    %c0_i32_1 = arith.constant 0 : i32
    return %c0_i32, %c0_i32_0 : i32, i32
  }
  func.func @transform_4(%arg0: i32) -> (i32, i32) {
    %c0_i32 = arith.constant 0 : i32
    %c0_i32_0 = arith.constant 0 : i32
    %c0_i32_1 = arith.constant 0 : i32
    return %c0_i32, %c0_i32_0 : i32, i32
  }
  func.func @transform_5(%arg0: i32) -> (i32, i32) {
    %c0_i32 = arith.constant 0 : i32
    %c0_i32_0 = arith.constant 0 : i32
    %c0_i32_1 = arith.constant 0 : i32
    return %c0_i32, %c0_i32_0 : i32, i32
  }
  func.func @transform_6(%arg0: i32) -> (i32, i32) {
    %c0_i32 = arith.constant 0 : i32
    %c0_i32_0 = arith.constant 0 : i32
    %c0_i32_1 = arith.constant 0 : i32
    return %c0_i32, %c0_i32_0 : i32, i32
  }
  func.func @transform_7(%arg0: i32) -> (i32, i32) {
    %c0_i32 = arith.constant 0 : i32
    %c0_i32_0 = arith.constant 0 : i32
    %c0_i32_1 = arith.constant 0 : i32
    return %c0_i32, %c0_i32_0 : i32, i32
  }
  func.func @transform_8(%arg0: i32) -> (i32, i32) {
    %c0_i32 = arith.constant 0 : i32
    %c0_i32_0 = arith.constant 0 : i32
    %c0_i32_1 = arith.constant 0 : i32
    return %c0_i32, %c0_i32_0 : i32, i32
  }
  func.func @transform_9(%arg0: i32) -> (i32, i32) {
    %c0_i32 = arith.constant 0 : i32
    %c0_i32_0 = arith.constant 0 : i32
    %c0_i32_1 = arith.constant 0 : i32
    return %c0_i32, %c0_i32_0 : i32, i32
  }
}

</mosaic_0001>

<bundles_post_ra>
// kernel: model2_forward.1
= control target key start
LH: loop header
LB: loop body
LE: loop exit
PB: predicated region body
PF: predicated region fallthrough
CT: control target
= control target key end

     0   :  { %s3979_s0 = inlined_call_operand.vmem [shape: bf16[192,96], index: 0, kind: input, shape index: {}]   ;;  %s3980_s1 = inlined_call_operand.vmem [shape: bf16[96,256], index: 1, kind: input, shape index: {}]   ;;  %s3981_s2 = inlined_call_operand.vmem [shape: f32[1,256], index: 2, kind: input, shape index: {}]   ;;  %s3982_s3 = inlined_call_operand.vmem [shape: bf16[768,32], index: 3, kind: input, shape index: {}]   ;;  %s3983_s4 = inlined_call_operand.vmem [shape: f32[1,32], index: 4, kind: input, shape index: {}]   ;;  %s3984_s5 = inlined_call_operand.vmem [shape: bf16[512,256], index: 5, kind: input, shape index: {}]   ;;  %s3985_s6 = inlined_call_operand.vmem [shape: f32[1,256], index: 6, kind: input, shape index: {}]   ;;  %s3986_s7 = inlined_call_operand.vmem [shape: bf16[256,10], index: 7, kind: input, shape index: {}]   ;;  %s3987_s8 = inlined_call_operand.vmem [shape: f32[1,10], index: 8, kind: input, shape index: {}]   ;;  %s3988_s9 = inlined_call_operand.hbm [shape: f32[4,10], index: 9, kind: output, shape index: {}]  }
   0x1   :  { %v2132_v0 = vld [vmem:[%s3980_s1 + $0x50] sm:$0xf]  ;;  %v2697_v1 = vld [vmem:[%s3980_s1 + $0x54] sm:$0xf0]  ;;  %v2696_v2 = vld [vmem:[%s3980_s1 + $0x54] sm:$0xf] }
   0x2   :  { %v2133_v3 = vor.u32 %v2697_v1, %v2132_v0  ;;  %v2134_v4 = vld [vmem:[%s3980_s1 + $0x58] sm:$0xf0]  ;;  %v2124_v5 = vld [vmem:[%s3980_s1 + $0x40] sm:$0xf]  ;;  %v2695_v6 = vld [vmem:[%s3980_s1 + $0x44] sm:$0xf0] }
   0x3   :  { %v2137_v7 = vor.u32 %v2696_v2, %v2134_v4  ;;  %v2694_v8 = vld [vmem:[%s3980_s1 + $0x44] sm:$0xf]  ;;  %v2126_v9 = vld [vmem:[%s3980_s1 + $0x48] sm:$0xf0]  ;;  %v2125_v10 = vor.u32 %v2695_v6, %v2124_v5  ;;  %v2116_v12 = vld [vmem:[%s3980_s1 + $0x30] sm:$0xf] }
   0x4   :  { %235 = vmatpush.bf16.msra.mxu0 %v2133_v3  ;;  %v2129_v11 = vor.u32 %v2694_v8, %v2126_v9  ;;  %v2693_v13 = vld [vmem:[%s3980_s1 + $0x34] sm:$0xf0]  ;;  %v2692_v14 = vld [vmem:[%s3980_s1 + $0x34] sm:$0xf]  ;;  %v2118_v15 = vld [vmem:[%s3980_s1 + $0x38] sm:$0xf0] }
   0x5   :  { %304 = vmatpush.bf16.msra.mxu1 %v2137_v7  ;;  %v2117_v16 = vor.u32 %v2693_v13, %v2116_v12  ;;  %v2108_v17 = vld [vmem:[%s3980_s1 + $0x20] sm:$0xf]  ;;  %v2121_v18 = vor.u32 %v2692_v14, %v2118_v15  ;;  %v2691_v19 = vld [vmem:[%s3980_s1 + $0x24] sm:$0xf0]  ;;  %v2690_v20 = vld [vmem:[%s3980_s1 + $0x24] sm:$0xf] }
   0x6   :  { %v2110_v21 = vld [vmem:[%s3980_s1 + $0x28] sm:$0xf0] }
   0x8   :  { %236 = vmatpush.bf16.msra.mxu0 %v2125_v10 }
   0x9   :  { %305 = vmatpush.bf16.msra.mxu1 %v2129_v11 }
   0xa   :  { %14 = vsyncpa [#allocation5], 0  ;;  %v2109_v22 = vor.u32 %v2691_v19, %v2108_v17  ;;  %v2113_v23 = vor.u32 %v2690_v20, %v2110_v21  ;;  %v2100_v24 = vld [vmem:[%s3980_s1 + $0x10] sm:$0xf]  ;;  %v2689_v25 = vld [vmem:[%s3980_s1 + $0x14] sm:$0xf0] }
   0xb   :  { %v2688_v26 = vld [vmem:[%s3980_s1 + $0x14] sm:$0xf]  ;;  %v2102_v27 = vld [vmem:[%s3980_s1 + $0x18] sm:$0xf0]  ;;  %v2101_v28 = vor.u32 %v2689_v25, %v2100_v24  ;;  %v2092_v30 = vld [vmem:[%s3980_s1] sm:$0xf] }
   0xc   :  { %237 = vmatpush.bf16.msra.mxu0 %v2117_v16  ;;  %v2105_v29 = vor.u32 %v2688_v26, %v2102_v27  ;;  %v2687_v31 = vld [vmem:[%s3980_s1 + $0x4] sm:$0xf0]  ;;  %v2686_v32 = vld [vmem:[%s3980_s1 + $0x4] sm:$0xf]  ;;  %v2094_v33 = vld [vmem:[%s3980_s1 + $0x8] sm:$0xf0] }
   0xd   :  { %306 = vmatpush.bf16.msra.mxu1 %v2121_v18  ;;  %v2093_v34 = vor.u32 %v2687_v31, %v2092_v30  ;;  %v2097_v35 = vor.u32 %v2686_v32, %v2094_v33  ;;  %v2674_v36 = vld [vmem:[%s3979_s0] sm:$0xff]  ;;  %vm196_vm0 = vcmask 785408   ;;  %v2675_v37 = vld [vmem:[%s3979_s0 + $0x8] sm:$0xff]  ;;  %v2676_v38 = vld [vmem:[%s3979_s0 + $0x10] sm:$0xff]  ;;  %v2863_v10 = vmov 0.0   ;;  %s2864_s29 = smov 32  }
   0xe   :  { %v2677_v39 = vld [vmem:[%s3979_s0 + $0x18] sm:$0xff]  ;;  %v2678_v40 = vld [vmem:[%s3979_s0 + $0x20] sm:$0xff]  ;;  %v2679_v41 = vld [vmem:[%s3979_s0 + $0x28] sm:$0xff]  ;;  %451 = vst [vmem:[#allocation2] sm:$0xff] %v2863_v10  ;;  %vm485_vm1 = vcmask 1043456   ;;  %vm678_vm2 = vcmask 1045504  }
   0xf   :  { %v2680_v42 = vld [vmem:[%s3979_s0 + $0x30] sm:$0xff]  ;;  %v2681_v43 = vld [vmem:[%s3979_s0 + $0x38] sm:$0xff]  ;;  %v2682_v44 = vld [vmem:[%s3979_s0 + $0x40] sm:$0xff]  ;;  %452 = vst [vmem:[#allocation2 + $0x38] sm:$0xff] %v2863_v10  ;;  %vm1237_vm3 = vcmask 257024   ;;  %s2865_s13 = smov 64  }
  0x10   :  { %238 = vmatpush.bf16.msra.mxu0 %v2109_v22  ;;  %v2683_v49 = vld [vmem:[%s3979_s0 + $0x48] sm:$0xff]  ;;  %v2684_v54 = vld [vmem:[%s3979_s0 + $0x50] sm:$0xff]  ;;  %v2685_v59 = vld [vmem:[%s3979_s0 + $0x58] sm:$0xff]  ;;  %467 = vst [vmem:[#allocation2 + $0x68] sm:$0xff] %v2863_v10  ;;  %s2866_s1 = smov 96   ;;  %vm1246_vm4 = vcmask 519424  }
  0x11   :  { %307 = vmatpush.bf16.msra.mxu1 %v2113_v23  ;;  %v2721_v11 = vld [vmem:[%s3982_s3 + $0xb8] sm:$0xff]  ;;  %468 = vst [vmem:[#allocation2 + $0x60] sm:$0xff] %v2863_v10  ;;  %v2720_v15 = vld [vmem:[%s3982_s3 + $0xb0] sm:$0xff]  ;;  %v2719_v17 = vld [vmem:[%s3982_s3 + $0xa8] sm:$0xff]  ;;  %vm1252_vm5 = vcmask 781824   ;;  %vm1260_vm6 = vcmask 1044224  }
  0x12   :  { %v2729_v12 = vld [vmem:[%s3982_s3 + $0xf8] sm:$0xff]  ;;  %801 = vmatpush.bf16.msra.mxu2 %v2721_v11  ;;  %v2728_v16 = vld [vmem:[%s3982_s3 + $0xf0] sm:$0xff]  ;;  %v2727_v18 = vld [vmem:[%s3982_s3 + $0xe8] sm:$0xff]  ;;  %vm2000_vm7 = vcmask 76800  }
  0x13   :  { %830 = vmatpush.bf16.msra.mxu3 %v2729_v12  ;;  %v2718_v21 = vld [vmem:[%s3982_s3 + $0xa0] sm:$0xff]  ;;  %v2717_v24 = vld [vmem:[%s3982_s3 + $0x98] sm:$0xff]  ;;  %v2716_v31 = vld [vmem:[%s3982_s3 + $0x90] sm:$0xff] }
  0x14   :  { %239 = vmatpush.bf16.msra.mxu0 %v2101_v28  ;;  %v2726_v22 = vld [vmem:[%s3982_s3 + $0xe0] sm:$0xff]  ;;  %v2725_v25 = vld [vmem:[%s3982_s3 + $0xd8] sm:$0xff]  ;;  %v2724_v32 = vld [vmem:[%s3982_s3 + $0xd0] sm:$0xff] }
  0x15   :  { %308 = vmatpush.bf16.msra.mxu1 %v2105_v29  ;;  %v70_v23 = vld [vmem:[%s3981_s2] sm:$0x3] }
  0x16   :  { %802 = vmatpush.bf16.msra.mxu2 %v2720_v15  ;;  %v3141_v27 = vperm.slane %v70_v23, 0  ;;  %v3145_v29 = vperm.slane %v70_v23, 1 }
  0x17   :  { %831 = vmatpush.bf16.msra.mxu3 %v2728_v16 }
  0x18   :  { %240 = vmatpush.bf16.msra.mxu0 %v2093_v34 }
  0x19   :  { %309 = vmatpush.bf16.msra.mxu1 %v2097_v35 }
  0x1a   :  { %803 = vmatpush.bf16.msra.mxu2 %v2719_v17 }
  0x1b   :  { %2138 = vmatmul.msk.bf16.vlgmr.msra.gmra.mxu0 %vm196_vm0, %v2674_v36  ;;  %832 = vmatpush.bf16.msra.mxu3 %v2727_v18 }
  0x1c   :  { %2150 = vmatmul.msk.bf16.vlgmr.msra.gmra.mxu1 %vm196_vm0, %v2674_v36 }
  0x1e   :  { %804 = vmatpush.bf16.msra.mxu2 %v2718_v21 }
  0x1f   :  { %833 = vmatpush.bf16.msra.mxu3 %v2726_v22 }
  0x22   :  { %805 = vmatpush.bf16.msra.mxu2 %v2717_v24 }
  0x23   :  { %834 = vmatpush.bf16.msra.mxu3 %v2725_v25 }
  0x26   :  { %806 = vmatpush.bf16.msra.mxu2 %v2716_v31 }
  0x27   :  { %835 = vmatpush.bf16.msra.mxu3 %v2724_v32 }
  0x2b   :  { %2139 = vmatmul.msk.bf16.gmra.mxu0 %vm196_vm0, %v2675_v37 }
  0x2c   :  { %2151 = vmatmul.msk.bf16.gmra.mxu1 %vm196_vm0, %v2675_v37  ;;  %v2715_v37 = vld [vmem:[%s3982_s3 + $0x88] sm:$0xff] }
  0x2d   :  { %807 = vmatpush.bf16.msra.mxu2 %v2715_v37 }
  0x3b   :  { %2140 = vmatmul.msk.bf16.gmra.mxu0 %vm196_vm0, %v2676_v38 }
  0x3c   :  { %2152 = vmatmul.msk.bf16.gmra.mxu1 %vm196_vm0, %v2676_v38  ;;  %v2723_v38 = vld [vmem:[%s3982_s3 + $0xc8] sm:$0xff] }
  0x3d   :  { %836 = vmatpush.bf16.msra.mxu3 %v2723_v38 }
  0x4b   :  { %2141 = vmatmul.msk.bf16.gmra.mxu0 %vm196_vm0, %v2677_v39 }
  0x4c   :  { %2153 = vmatmul.msk.bf16.gmra.mxu1 %vm196_vm0, %v2677_v39 }
  0x5b   :  { %2142 = vmatmul.msk.bf16.gmra.mxu0 %vm196_vm0, %v2678_v40 }
  0x5c   :  { %2154 = vmatmul.msk.bf16.gmra.mxu1 %vm196_vm0, %v2678_v40 }
  0x6b   :  { %2143 = vmatmul.msk.bf16.gmra.mxu0 %vm196_vm0, %v2679_v41 }
  0x6c   :  { %2155 = vmatmul.msk.bf16.gmra.mxu1 %vm196_vm0, %v2679_v41 }
  0x7b   :  { %2144 = vmatmul.msk.bf16.gmra.mxu0 %vm196_vm0, %v2680_v42 }
  0x7c   :  { %2156 = vmatmul.msk.bf16.gmra.mxu1 %vm196_vm0, %v2680_v42 }
  0x8b   :  { %2145 = vmatmul.msk.bf16.gmra.mxu0 %vm196_vm0, %v2681_v43 }
  0x8c   :  { %2157 = vmatmul.msk.bf16.gmra.mxu1 %vm196_vm0, %v2681_v43 }
  0x98   :  { %v3033_v45 = vpop.f32.mrf.mxu0 }
  0x99   :  { %v3035_v46 = vpop.f32.mrf.mxu1  ;;  %v243_v34 = vadd.f32 %v3033_v45, %v3141_v27 }
  0x9a   :  { %v312_v35 = vadd.f32 %v3035_v46, %v3145_v29 }
  0x9b   :  { %2146 = vmatmul.msk.bf16.gmra.mxu0 %vm196_vm0, %v2682_v44  ;;  %v371_v41 = vmax.f32 %v243_v34, 0.0 }
  0x9c   :  { %2158 = vmatmul.msk.bf16.gmra.mxu1 %vm196_vm0, %v2682_v44  ;;  %v372_v44 = vmax.f32 %v312_v35, 0.0 }
  0xa0   :  { %v3039_v47 = vpop.f32.mrf.mxu0 }
  0xa1   :  { %v3041_v48 = vpop.f32.mrf.mxu1  ;;  %v245_v12 = vadd.f32 %v3039_v47, %v3141_v27 }
  0xa3   :  { %v373_v24 = vmax.f32 %v245_v12, 0.0 }
  0xa8   :  { %v3046_v50 = vpop.f32.mrf.mxu0 }
  0xa9   :  { %v3048_v51 = vpop.f32.mrf.mxu1 }
  0xaa   :  { %v317_v38 = vadd.f32 %v3048_v51, %v3145_v29 }
  0xab   :  { %2147 = vmatmul.msk.bf16.gmra.mxu0 %vm196_vm0, %v2683_v49 }
  0xac   :  { %2159 = vmatmul.msk.bf16.gmra.mxu1 %vm196_vm0, %v2683_v49 }
  0xb0   :  { %v3052_v52 = vpop.f32.mrf.mxu0 }
  0xb1   :  { %v3054_v53 = vpop.f32.mrf.mxu1 }
  0xb8   :  { %v3059_v55 = vpop.f32.mrf.mxu0 }
  0xb9   :  { %v3061_v56 = vpop.f32.mrf.mxu1 }
  0xbb   :  { %2148 = vmatmul.msk.bf16.gmra.mxu0 %vm196_vm0, %v2684_v54 }
  0xbc   :  { %2160 = vmatmul.msk.bf16.gmra.mxu1 %vm196_vm0, %v2684_v54 }
  0xc0   :  { %v3065_v57 = vpop.f32.mrf.mxu0 }
  0xc1   :  { %v3067_v58 = vpop.f32.mrf.mxu1 }
  0xc8   :  { %v3072_v60 = vpop.f32.mrf.mxu0 }
  0xc9   :  { %v3074_v61 = vpop.f32.mrf.mxu1 }
  0xcb   :  { %2149 = vmatmul.msk.bf16.gmra.mxu0 %vm196_vm0, %v2685_v59 }
  0xcc   :  { %2161 = vmatmul.msk.bf16.gmra.mxu1 %vm196_vm0, %v2685_v59  ;;  %v2714_v59 = vld [vmem:[%s3982_s3 + $0x80] sm:$0xff] }
  0xcd   :  { %808 = vmatpush.bf16.msra.mxu2 %v2714_v59 }
  0xd0   :  { %v3078_v62 = vpop.f32.mrf.mxu0 }
  0xd1   :  { %v3080_v63 = vpop.f32.mrf.mxu1 }
  0xd8   :  { %v262_v0 = vpop.f32.mrf.mxu0 }
  0xd9   :  { %v331_v1 = vpop.f32.mrf.mxu1  ;;  %v263_v30 = vadd.f32 %v262_v0, %v3141_v27  ;;  %v2722_v0 = vld [vmem:[%s3982_s3 + $0xc0] sm:$0xff] }
  0xda   :  { %v332_v33 = vadd.f32 %v331_v1, %v3145_v29  ;;  %837 = vmatpush.bf16.msra.mxu3 %v2722_v0 }
  0xdb   :  { %v387_v36 = vmax.f32 %v263_v30, 0.0 }
  0xdc   :  { %v388_v39 = vmax.f32 %v332_v33, 0.0 }
  0xdd   :  { %v419_v46 = vmax.f32 %v371_v41, %v387_v36  ;;  %v248_v36 = vadd.f32 %v3046_v50, %v3141_v27 }
  0xde   :  { %v420_v1 = vmax.f32 %v372_v44, %v388_v39 }
  0xdf   :  { %v375_v44 = vmax.f32 %v248_v36, 0.0 }
  0xe0   :  { %v3082_v2 = vpop.f32.mrf.mxu0 }
  0xe1   :  { %v3084_v3 = vpop.f32.mrf.mxu1  ;;  %v265_v49 = vadd.f32 %v3082_v2, %v3141_v27  ;;  %v314_v2 = vadd.f32 %v3041_v48, %v3145_v29 }
  0xe2   :  { %v334_v10 = vadd.f32 %v3084_v3, %v3145_v29 }
  0xe3   :  { %v389_v17 = vmax.f32 %v265_v49, 0.0  ;;  %v374_v30 = vmax.f32 %v314_v2, 0.0  ;;  %v376_v49 = vmax.f32 %v317_v38, 0.0 }
  0xe4   :  { %v390_v21 = vmax.f32 %v334_v10, 0.0  ;;  %v2713_v10 = vld [vmem:[%s3982_s3 + $0x78] sm:$0xff] }
  0xe5   :  { %v421_v31 = vmax.f32 %v373_v24, %v389_v17  ;;  %984 = vmatpush.bf16.msrb.mxu3 %v2713_v10 }
  0xe6   :  { %v422_v33 = vmax.f32 %v374_v30, %v390_v21 }
  0xe8   :  { %v3086_v4 = vpop.f32.mrf.mxu0 }
  0xe9   :  { %v3088_v5 = vpop.f32.mrf.mxu1  ;;  %v268_v32 = vadd.f32 %v3086_v4, %v3141_v27 }
  0xea   :  { %v337_v34 = vadd.f32 %v3088_v5, %v3145_v29 }
  0xf0   :  { %v3090_v6 = vpop.f32.mrf.mxu0 }
  0xf1   :  { %v3092_v7 = vpop.f32.mrf.mxu1  ;;  %v270_v59 = vadd.f32 %v3090_v6, %v3141_v27  ;;  %v319_v6 = vadd.f32 %v3054_v53, %v3145_v29 }
  0xf8   :  { %v3094_v8 = vpop.f32.mrf.mxu0 }
  0xf9   :  { %v3096_v9 = vpop.f32.mrf.mxu1 }
 0x100   :  { %v3104_v13 = vpop.f32.mrf.mxu0 }
 0x101   :  { %v3106_v14 = vpop.f32.mrf.mxu1 }
 0x108   :  { %v3120_v19 = vpop.f32.mrf.mxu0 }
 0x109   :  { %v3122_v20 = vpop.f32.mrf.mxu1 }
 0x110   :  { %v3139_v26 = vpop.f32.mrf.mxu0 }
 0x111   :  { %v3143_v28 = vpop.f32.mrf.mxu1 }
 0x118   :  { %v282_v40 = vpop.f32.mrf.mxu0 }
 0x119   :  { %v283_v42 = vadd.f32 %v282_v40, %v3141_v27  ;;  %v351_v43 = vpop.f32.mrf.mxu1  ;;  %v391_v40 = vmax.f32 %v268_v32, 0.0 }
 0x11a   :  { %v352_v45 = vadd.f32 %v351_v43, %v3145_v29 }
 0x11b   :  { %v403_v54 = vmax.f32 %v283_v42, 0.0  ;;  %v392_v42 = vmax.f32 %v337_v34, 0.0 }
 0x11c   :  { %v404_v11 = vmax.f32 %v352_v45, 0.0 }
 0x11d   :  { %v435_v15 = vmax.f32 %v419_v46, %v403_v54  ;;  %v423_v54 = vmax.f32 %v375_v44, %v391_v40  ;;  %v424_v12 = vmax.f32 %v376_v49, %v392_v42  ;;  %v255_v49 = vadd.f32 %v3065_v57, %v3141_v27 }
 0x11e   :  { %v436_v16 = vmax.f32 %v420_v1, %v404_v11  ;;  %v2705_v1 = vld [vmem:[%s3982_s3 + $0x38] sm:$0xff]  ;;  %v250_v11 = vadd.f32 %v3052_v52, %v3141_v27  ;;  %v273_v52 = vadd.f32 %v3094_v8, %v3141_v27  ;;  %v253_v8 = vadd.f32 %v3059_v55, %v3141_v27 }
 0x11f   :  { %v486_v18 = vrot.slane %v435_v15, 4  ;;  %v339_v15 = vadd.f32 %v3092_v7, %v3145_v29  ;;  %955 = vmatpush.bf16.msrb.mxu2 %v2705_v1 }
 0x120   :  { %v487_v22 = vrot.slane %v436_v16, 4  ;;  %v284_v23 = vpop.f32.mrf.mxu0  ;;  %v395_v40 = vmax.f32 %v273_v52, 0.0  ;;  %v379_v44 = vmax.f32 %v253_v8, 0.0 }
 0x121   :  { %534 = vst [vmem:[#allocation2] sm:$0xf0] %v486_v18  ;;  %v285_v3 = vadd.f32 %v284_v23, %v3141_v27  ;;  %v353_v25 = vpop.f32.mrf.mxu1  ;;  %v394_v23 = vmax.f32 %v339_v15, 0.0 }
 0x122   :  { %535 = vst [vmem:[#allocation2 + $0x38] sm:$0xf0] %v487_v22  ;;  %v354_v47 = vadd.f32 %v353_v25, %v3145_v29  ;;  %v378_v25 = vmax.f32 %v319_v6, 0.0  ;;  %v275_v6 = vadd.f32 %v3104_v13, %v3141_v27  ;;  %v2711_v13 = vld [vmem:[%s3982_s3 + $0x68] sm:$0xff] }
 0x123   :  { %v405_v48 = vmax.f32 %v285_v3, 0.0 }
 0x124   :  { %v406_v35 = vmax.f32 %v354_v47, 0.0  ;;  %v342_v47 = vadd.f32 %v3096_v9, %v3145_v29  ;;  %v2712_v9 = vld [vmem:[%s3982_s3 + $0x70] sm:$0xff]  ;;  %v426_v38 = vmax.f32 %v378_v25, %v394_v23 }
 0x125   :  { %v437_v37 = vmax.f32 %v421_v31, %v405_v48  ;;  %985 = vmatpush.bf16.msrb.mxu3 %v2712_v9 }
 0x126   :  { %v438_v39 = vmax.f32 %v422_v33, %v406_v35  ;;  %v2704_v35 = vld [vmem:[%s3982_s3 + $0x30] sm:$0xff]  ;;  %v396_v42 = vmax.f32 %v342_v47, 0.0  ;;  %v2702_v47 = vld [vmem:[%s3982_s3 + $0x20] sm:$0xff] }
 0x127   :  { %v488_v41 = vrot.slane %v437_v37, 4  ;;  %v322_v37 = vadd.f32 %v3061_v56, %v3145_v29  ;;  %956 = vmatpush.bf16.msrb.mxu2 %v2704_v35 }
 0x128   :  { %v490_v43 = vrot.slane %v438_v39, 4  ;;  %v287_v4 = vpop.f32.mrf.mxu0 }
 0x129   :  { %v3192_v45 = vsel %vm485_vm1, %v486_v18, %v488_v41  ;;  %v288_v5 = vadd.f32 %v287_v4, %v3141_v27  ;;  %v356_v46 = vpop.f32.mrf.mxu1  ;;  %v393_v18 = vmax.f32 %v270_v59, 0.0  ;;  %v609_v4 = vld [vmem:[#allocation2 + $0x38] sm:$0xf0]  ;;  %v427_v59 = vmax.f32 %v379_v44, %v395_v40  ;;  %986 = vmatpush.bf16.msrb.mxu3 %v2711_v13 }
 0x12a   :  { %v3196_v50 = vsel %vm485_vm1, %v487_v22, %v490_v43  ;;  %v357_v51 = vadd.f32 %v356_v46, %v3145_v29  ;;  %v377_v22 = vmax.f32 %v250_v11, 0.0  ;;  %v380_v46 = vmax.f32 %v322_v37, 0.0 }
 0x12b   :  { %v407_v0 = vmax.f32 %v288_v5, 0.0  ;;  %v659_v11 = vpack.c.bf16 %v3196_v50, %v609_v4  ;;  %v381_v37 = vmax.f32 %v255_v49, 0.0  ;;  %v2709_v4 = vld [vmem:[%s3982_s3 + $0x58] sm:$0xff] }
 0x12c   :  { %v408_v2 = vmax.f32 %v357_v51, 0.0  ;;  %v425_v33 = vmax.f32 %v377_v22, %v393_v18  ;;  %v344_v18 = vadd.f32 %v3106_v14, %v3145_v29 }
 0x12d   :  { %v439_v16 = vmax.f32 %v423_v54, %v407_v0  ;;  %v682_v52 = vrot.slane %v659_v11, 2 }
 0x12e   :  { %v440_v17 = vmax.f32 %v424_v12, %v408_v2  ;;  %v428_v12 = vmax.f32 %v380_v46, %v396_v42  ;;  %v278_v46 = vadd.f32 %v3120_v19, %v3141_v27  ;;  %v2700_v19 = vld [vmem:[%s3982_s3 + $0x10] sm:$0xff] }
 0x12f   :  { %v492_v21 = vrot.slane %v439_v16, 4 }
 0x130   :  { %v494_v24 = vrot.slane %v440_v17, 4  ;;  %v289_v3 = vpop.f32.mrf.mxu0 }
 0x131   :  { %v3216_v7 = vsel %vm485_vm1, %v488_v41, %v492_v21  ;;  %v290_v30 = vadd.f32 %v289_v3, %v3141_v27  ;;  %v358_v53 = vpop.f32.mrf.mxu1  ;;  %v608_v41 = vld [vmem:[#allocation2] sm:$0xf0]  ;;  %v324_v3 = vadd.f32 %v3067_v58, %v3145_v29  ;;  %v397_v58 = vmax.f32 %v275_v6, 0.0 }
 0x132   :  { %v3222_v31 = vsel %vm485_vm1, %v490_v43, %v494_v24  ;;  %v359_v32 = vadd.f32 %v358_v53, %v3145_v29  ;;  %v1047_v48 = vpack.c.bf16 %v3216_v7, %v3192_v45  ;;  %v658_v56 = vpack.c.bf16 %v3192_v45, %v608_v41 }
 0x133   :  { %v409_v34 = vmax.f32 %v290_v30, 0.0  ;;  %v1048_v36 = vpack.c.bf16 %v3222_v31, %v3196_v50 }
 0x134   :  { %v410_v39 = vmax.f32 %v359_v32, 0.0  ;;  %v679_v22 = vrot.slane %v658_v56, 2  ;;  %v2710_v32 = vld [vmem:[%s3982_s3 + $0x60] sm:$0xff]  ;;  %v347_v56 = vadd.f32 %v3122_v20, %v3145_v29  ;;  %v399_v20 = vmax.f32 %v278_v46, 0.0 }
 0x135   :  { %v441_v55 = vmax.f32 %v425_v33, %v409_v34  ;;  %v398_v34 = vmax.f32 %v344_v18, 0.0  ;;  %987 = vmatpush.bf16.msrb.mxu3 %v2710_v32 }
 0x136   :  { %v442_v43 = vmax.f32 %v426_v38, %v410_v39  ;;  %v382_v38 = vmax.f32 %v324_v3, 0.0 }
 0x137   :  { %v496_v5 = vrot.slane %v441_v55, 4 }
 0x138   :  { %v498_v51 = vrot.slane %v442_v43, 4  ;;  %v292_v54 = vpop.f32.mrf.mxu0  ;;  %v2701_v43 = vld [vmem:[%s3982_s3 + $0x18] sm:$0xff] }
 0x139   :  { %v3243_v0 = vsel %vm485_vm1, %v492_v21, %v496_v5  ;;  %v293_v1 = vadd.f32 %v292_v54, %v3141_v27  ;;  %v361_v10 = vpop.f32.mrf.mxu1  ;;  %v430_v54 = vmax.f32 %v382_v38, %v398_v34  ;;  %988 = vmatpush.bf16.msrb.mxu3 %v2709_v4 }
 0x13a   :  { %v3248_v15 = vsel %vm485_vm1, %v494_v24, %v498_v51  ;;  %v362_v2 = vadd.f32 %v361_v10, %v3145_v29  ;;  %v3253_v57 = vpack.c.bf16 %v3243_v0, %v3216_v7  ;;  %v2703_v24 = vld [vmem:[%s3982_s3 + $0x28] sm:$0xff]  ;;  %v327_v10 = vadd.f32 %v3074_v61, %v3145_v29 }
 0x13b   :  { %v411_v16 = vmax.f32 %v293_v1, 0.0  ;;  %v3259_v17 = vpack.c.bf16 %v3248_v15, %v3222_v31  ;;  %957 = vmatpush.bf16.msrb.mxu2 %v2703_v24  ;;  %v258_v1 = vadd.f32 %v3072_v60, %v3141_v27 }
 0x13c   :  { %v412_v21 = vmax.f32 %v362_v2, 0.0  ;;  %v680_v23 = vrot.slane %v3253_v57, 2  ;;  %v2708_v2 = vld [vmem:[%s3982_s3 + $0x50] sm:$0xff] }
 0x13d   :  { %v443_v25 = vmax.f32 %v427_v59, %v411_v16  ;;  %v683_v30 = vrot.slane %v3259_v17, 2  ;;  %v400_v16 = vmax.f32 %v347_v56, 0.0  ;;  %989 = vmatpush.bf16.msrb.mxu3 %v2708_v2 }
 0x13e   :  { %v444_v14 = vmax.f32 %v428_v12, %v412_v21  ;;  %v681_v53 = vsel %vm678_vm2, %v679_v22, %v680_v23  ;;  %v383_v21 = vmax.f32 %v258_v1, 0.0  ;;  %v384_v22 = vmax.f32 %v327_v10, 0.0  ;;  %v2698_v1 = vld [vmem:[%s3982_s3] sm:$0xff] }
 0x13f   :  { %v500_v8 = vrot.slane %v443_v25, 4  ;;  %809 = vmatmul.bf16.vlgmr.msra.gmra.mxu2 %v681_v53  ;;  %v684_v33 = vsel %vm678_vm2, %v682_v52, %v683_v30  ;;  %v280_v53 = vadd.f32 %v3139_v26, %v3141_v27  ;;  %v2706_v10 = vld [vmem:[%s3982_s3 + $0x40] sm:$0xff] }
 0x140   :  { %v502_v35 = vrot.slane %v444_v14, 4  ;;  %v294_v9 = vpop.f32.mrf.mxu0  ;;  %838 = vmatmul.bf16.vlgmr.msra.gmra.mxu3 %v684_v33  ;;  %958 = vmatpush.bf16.msrb.mxu2 %v2702_v47  ;;  %v431_v14 = vmax.f32 %v383_v21, %v399_v20 }
 0x141   :  { %v3286_v39 = vsel %vm485_vm1, %v496_v5, %v500_v8  ;;  %v295_v40 = vadd.f32 %v294_v9, %v3141_v27  ;;  %v363_v55 = vpop.f32.mrf.mxu1  ;;  %v429_v5 = vmax.f32 %v381_v37, %v397_v58  ;;  %v432_v58 = vmax.f32 %v384_v22, %v400_v16 }
 0x142   :  { %v3290_v41 = vsel %vm485_vm1, %v498_v51, %v502_v35  ;;  %v364_v42 = vadd.f32 %v363_v55, %v3145_v29  ;;  %v1049_v44 = vpack.c.bf16 %v3286_v39, %v3243_v0  ;;  %v329_v9 = vadd.f32 %v3080_v63, %v3145_v29  ;;  %v2699_v63 = vld [vmem:[%s3982_s3 + $0x8] sm:$0xff] }
 0x143   :  { %v413_v49 = vmax.f32 %v295_v40, 0.0  ;;  %v1050_v51 = vpack.c.bf16 %v3290_v41, %v3248_v15  ;;  %v401_v55 = vmax.f32 %v280_v53, 0.0 }
 0x144   :  { %v414_v59 = vmax.f32 %v364_v42, 0.0  ;;  %959 = vmatpush.bf16.msrb.mxu2 %v2701_v43  ;;  %v386_v46 = vmax.f32 %v329_v9, 0.0 }
 0x145   :  { %v445_v11 = vmax.f32 %v429_v5, %v413_v49  ;;  %v2707_v5 = vld [vmem:[%s3982_s3 + $0x48] sm:$0xff] }
 0x146   :  { %v446_v12 = vmax.f32 %v430_v54, %v414_v59  ;;  %990 = vmatpush.bf16.msrb.mxu3 %v2707_v5 }
 0x147   :  { %v504_v6 = vrot.slane %v445_v11, 4 }
 0x148   :  { %v506_v18 = vrot.slane %v446_v12, 4  ;;  %v297_v60 = vpop.f32.mrf.mxu0  ;;  %960 = vmatpush.bf16.msrb.mxu2 %v2700_v19 }
 0x149   :  { %v3318_v61 = vsel %vm485_vm1, %v500_v8, %v504_v6  ;;  %v298_v24 = vadd.f32 %v297_v60, %v3141_v27  ;;  %v366_v13 = vpop.f32.mrf.mxu1  ;;  %v349_v8 = vadd.f32 %v3143_v28, %v3145_v29 }
 0x14a   :  { %v3322_v3 = vsel %vm485_vm1, %v502_v35, %v506_v18  ;;  %v367_v25 = vadd.f32 %v366_v13, %v3145_v29  ;;  %v3327_v52 = vpack.c.bf16 %v3318_v61, %v3286_v39  ;;  %v260_v35 = vadd.f32 %v3078_v62, %v3141_v27  ;;  %991 = vmatpush.bf16.msrb.mxu3 %v2706_v10  ;;  %v2739_v10 = vld [vmem:[%s3982_s3 + $0x148] sm:$0xff] }
 0x14b   :  { %v415_v47 = vmax.f32 %v298_v24, 0.0  ;;  %v3333_v32 = vpack.c.bf16 %v3322_v3, %v3290_v41  ;;  %v402_v43 = vmax.f32 %v349_v8, 0.0  ;;  %v2736_v8 = vld [vmem:[%s3982_s3 + $0x130] sm:$0xff] }
 0x14c   :  { %v416_v33 = vmax.f32 %v367_v25, 0.0  ;;  %v685_v34 = vrot.slane %v3327_v52, 2  ;;  %961 = vmatpush.bf16.msrb.mxu2 %v2699_v63  ;;  %v553_v63 = vld [vmem:[#allocation2 + $0x38] sm:$0xff] }
 0x14d   :  { %v447_v37 = vmax.f32 %v431_v14, %v415_v47  ;;  %v687_v26 = vrot.slane %v3333_v32, 2  ;;  %v434_v2 = vmax.f32 %v386_v46, %v402_v43  ;;  %v2737_v47 = vld [vmem:[%s3982_s3 + $0x138] sm:$0xff]  ;;  %v2734_v43 = vld [vmem:[%s3982_s3 + $0x120] sm:$0xff] }
 0x14e   :  { %v448_v38 = vmax.f32 %v432_v58, %v416_v33  ;;  %v686_v40 = vsel %vm678_vm2, %v680_v23, %v685_v34  ;;  %v385_v23 = vmax.f32 %v260_v35, 0.0  ;;  %v2745_v58 = vld [vmem:[%s3982_s3 + $0x178] sm:$0xff]  ;;  %v2744_v33 = vld [vmem:[%s3982_s3 + $0x170] sm:$0xff] }
 0x14f   :  { %v508_v42 = vrot.slane %v447_v37, 4  ;;  %814 = vmatmul.bf16.gmra.mxu2 %v686_v40  ;;  %v688_v28 = vsel %vm678_vm2, %v683_v30, %v687_v26  ;;  %1180 = vmatpush.bf16.msra.mxu3 %v2745_v58  ;;  %v2733_v46 = vld [vmem:[%s3982_s3 + $0x118] sm:$0xff] }
 0x150   :  { %v510_v62 = vrot.slane %v448_v38, 4  ;;  %v299_v4 = vpop.f32.mrf.mxu0  ;;  %843 = vmatmul.bf16.gmra.mxu3 %v688_v28  ;;  %962 = vmatpush.bf16.msrb.mxu2 %v2698_v1  ;;  %v2743_v28 = vld [vmem:[%s3982_s3 + $0x168] sm:$0xff] }
 0x151   :  { %v3356_v49 = vsel %vm485_vm1, %v504_v6, %v508_v42  ;;  %v300_v54 = vadd.f32 %v299_v4, %v3141_v27  ;;  %v368_v30 = vpop.f32.mrf.mxu1  ;;  %v433_v27 = vmax.f32 %v385_v23, %v401_v55  ;;  %v552_v4 = vld [vmem:[#allocation2] sm:$0xff]  ;;  %v601_v23 = vpack.c.bf16 %v3196_v50, %v553_v63 }
 0x152   :  { %v3360_v56 = vsel %vm485_vm1, %v506_v18, %v510_v62  ;;  %v369_v59 = vadd.f32 %v368_v30, %v3145_v29  ;;  %v1051_v11 = vpack.c.bf16 %v3356_v49, %v3318_v61  ;;  %v600_v5 = vpack.c.bf16 %v3192_v45, %v552_v4  ;;  %v2732_v30 = vld [vmem:[%s3982_s3 + $0x110] sm:$0xff]  ;;  %v2731_v1 = vld [vmem:[%s3982_s3 + $0x108] sm:$0xff]  ;;  %v2761_v4 = vld [vmem:[%s3984_s5 + $0x74] sm:$0xf0] }
 0x153   :  { %v417_v12 = vmax.f32 %v300_v54, 0.0  ;;  %v1052_v19 = vpack.c.bf16 %v3360_v56, %v3322_v3  ;;  %1181 = vmatpush.bf16.msra.mxu3 %v2744_v33  ;;  %v2741_v54 = vld [vmem:[%s3982_s3 + $0x158] sm:$0xff] }
 0x154   :  { %v418_v29 = vmax.f32 %v369_v59, 0.0  ;;  %1151 = vmatpush.bf16.msra.mxu2 %v2737_v47  ;;  %v2740_v59 = vld [vmem:[%s3982_s3 + $0x150] sm:$0xff] }
 0x155   :  { %v449_v20 = vmax.f32 %v433_v27, %v417_v12  ;;  %v2730_v27 = vld [vmem:[%s3982_s3 + $0x100] sm:$0xff] }
 0x156   :  { %v450_v6 = vmax.f32 %v434_v2, %v418_v29 }
 0x157   :  { %v512_v16 = vrot.slane %v449_v20, 4  ;;  %1182 = vmatpush.bf16.msra.mxu3 %v2743_v28 }
 0x158   :  { %v514_v18 = vrot.slane %v450_v6, 4  ;;  %1152 = vmatpush.bf16.msra.mxu2 %v2736_v8 }
 0x159   :  { %v3374_v60 = vsel %vm485_vm1, %v508_v42, %v512_v16  ;;  %550 = vst [vmem:[#allocation2 + $0x68] sm:$0xf] %v512_v16  ;;  %v2735_v42 = vld [vmem:[%s3982_s3 + $0x128] sm:$0xff] }
 0x15a   :  { %v3377_v21 = vsel %vm485_vm1, %v510_v62, %v514_v18  ;;  %v664_v22 = vpack.c.bf16 %v3374_v60, %v3356_v49  ;;  %551 = vst [vmem:[#allocation2 + $0x60] sm:$0xf] %v514_v18  ;;  %v2742_v62 = vld [vmem:[%s3982_s3 + $0x160] sm:$0xff] }
 0x15b   :  { %v665_v24 = vpack.c.bf16 %v3377_v21, %v3360_v56  ;;  %1183 = vmatpush.bf16.msra.mxu3 %v2742_v62  ;;  %v2412_v62 = vld [vmem:[%s3984_s5 + $0x70] sm:$0xf] }
 0x15c   :  { %v689_v13 = vrot.slane %v664_v22, 2  ;;  %1153 = vmatpush.bf16.msra.mxu2 %v2735_v42 }
 0x15d   :  { %v691_v25 = vrot.slane %v665_v24, 2 }
 0x15e   :  { %v690_v14 = vsel %vm678_vm2, %v685_v34, %v689_v13 }
 0x15f   :  { %819 = vmatmul.bf16.gmra.mxu2 %v690_v14  ;;  %v692_v53 = vsel %vm678_vm2, %v687_v26, %v691_v25  ;;  %1184 = vmatpush.bf16.msra.mxu3 %v2741_v54 }
 0x160   :  { %848 = vmatmul.bf16.gmra.mxu3 %v692_v53  ;;  %v624_v34 = vld [vmem:[#allocation2 + $0x68] sm:$0xf]  ;;  %1154 = vmatpush.bf16.msra.mxu2 %v2734_v43 }
 0x161   :  { %v625_v35 = vld [vmem:[#allocation2 + $0x60] sm:$0xf]  ;;  %v666_v9 = vpack.c.bf16 %v624_v34, %v624_v34  ;;  %v1013_v41 = vld [vmem:[#allocation2 + $0x68] sm:$0xff] }
 0x162   :  { %v667_v37 = vpack.c.bf16 %v625_v35, %v625_v35 }
 0x163   :  { %v693_v26 = vrot.slane %v666_v9, 2  ;;  %1185 = vmatpush.bf16.msra.mxu3 %v2740_v59  ;;  %v2777_v59 = vld [vmem:[%s3984_s5 + $0xf4] sm:$0xf0] }
 0x164   :  { %v695_v38 = vrot.slane %v667_v37, 2  ;;  %1155 = vmatpush.bf16.msra.mxu2 %v2733_v46 }
 0x165   :  { %v694_v40 = vsel %vm678_vm2, %v689_v13, %v693_v26 }
 0x166   :  { %v696_v55 = vsel %vm678_vm2, %v691_v25, %v695_v38 }
 0x167   :  { %1186 = vmatpush.bf16.msra.mxu3 %v2739_v10 }
 0x168   :  { %1156 = vmatpush.bf16.msra.mxu2 %v2732_v30  ;;  %v2476_v30 = vld [vmem:[%s3984_s5 + $0xf0] sm:$0xf] }
 0x169   :  { %v2477_v10 = vor.u32 %v2777_v59, %v2476_v30 }
 0x16b   :  { %1747 = vmatpush.bf16.msrb.mxu1 %v2477_v10 }
 0x16c   :  { %1157 = vmatpush.bf16.msra.mxu2 %v2731_v1 }
 0x16f   :  { %824 = vmatmul.bf16.gmra.mxu2 %v694_v40 }
 0x170   :  { %853 = vmatmul.bf16.gmra.mxu3 %v696_v55  ;;  %1158 = vmatpush.bf16.msra.mxu2 %v2730_v27 }
 0x17f   :  { %963 = vmatmul.bf16.vlgmr.msrb.gmra.mxu2 %v600_v5 }
 0x180   :  { %992 = vmatmul.bf16.vlgmr.msrb.gmra.mxu3 %v601_v23  ;;  %v2413_v23 = vor.u32 %v2761_v4, %v2412_v62 }
 0x182   :  { %1734 = vmatpush.bf16.msrb.mxu0 %v2413_v23 }
 0x18f   :  { %968 = vmatmul.bf16.gmra.mxu2 %v3253_v57  ;;  %v2738_v57 = vld [vmem:[%s3982_s3 + $0x140] sm:$0xff] }
 0x190   :  { %997 = vmatmul.bf16.gmra.mxu3 %v3259_v17 }
 0x191   :  { %1187 = vmatpush.bf16.msra.mxu3 %v2738_v57  ;;  %v3494_v57 = vld [vmem:[%s3983_s4] ss:$0 sm:$0xff]  ;;  %s2033_s4 = sshll.u32 %s3988_s9, 4  ;;  %s2034_s4 = int_to_ptr.hbm [resolvable:$true] %s2033_s4 }
 0x19f   :  { %973 = vmatmul.bf16.gmra.mxu2 %v3327_v52 }
 0x1a0   :  { %1002 = vmatmul.bf16.gmra.mxu3 %v3333_v32  ;;  %v1053_v32 = vpack.c.bf16 %v1013_v41, %v3374_v60  ;;  %v2404_v41 = vld [vmem:[%s3984_s5 + $0x60] sm:$0xf] }
 0x1af   :  { %978 = vmatmul.bf16.gmra.mxu2 %v664_v22 }
 0x1b0   :  { %1007 = vmatmul.bf16.gmra.mxu3 %v665_v24 }
 0x1bf   :  { %1159 = vmatmul.bf16.vlgmr.msra.gmra.mxu2 %v1047_v48 }
 0x1c0   :  { %1188 = vmatmul.bf16.vlgmr.msra.gmra.mxu3 %v1048_v36 }
 0x1c2   :  { %v810_v17 = vpop.f32.mrf.mxu2 }
 0x1c3   :  { %v839_v12 = vpop.f32.mrf.mxu3 }
 0x1c4   :  { %v840_v2 = vadd.f32 %v839_v12, %v810_v17 }
 0x1ca   :  { %v3447_v29 = vpop.f32.mrf.mxu2 }
 0x1cb   :  { %v3449_v20 = vpop.f32.mrf.mxu3 }
 0x1cc   :  { %v842_v17 = vadd.f32 %v3449_v20, %v3447_v29  ;;  %v2759_v29 = vld [vmem:[%s3984_s5 + $0x64] sm:$0xf0] }
 0x1cd   :  { %v2405_v20 = vor.u32 %v2759_v29, %v2404_v41 }
 0x1cf   :  { %1164 = vmatmul.bf16.gmra.mxu2 %v1049_v44  ;;  %1735 = vmatpush.bf16.msrb.mxu0 %v2405_v20 }
 0x1d0   :  { %1193 = vmatmul.bf16.gmra.mxu3 %v1050_v51  ;;  %v1014_v51 = vld [vmem:[#allocation2 + $0x60] sm:$0xff] }
 0x1d1   :  { %v1054_v6 = vpack.c.bf16 %v1014_v51, %v3377_v21 }
 0x1d2   :  { %v815_v45 = vpop.f32.mrf.mxu2 }
 0x1d3   :  { %v844_v7 = vpop.f32.mrf.mxu3 }
 0x1d4   :  { %v845_v48 = vadd.f32 %v844_v7, %v815_v45 }
 0x1da   :  { %v3457_v50 = vpop.f32.mrf.mxu2 }
 0x1db   :  { %v3459_v31 = vpop.f32.mrf.mxu3 }
 0x1df   :  { %1169 = vmatmul.bf16.gmra.mxu2 %v1051_v11 }
 0x1e0   :  { %1198 = vmatmul.bf16.gmra.mxu3 %v1052_v19 }
 0x1e2   :  { %v820_v36 = vpop.f32.mrf.mxu2 }
 0x1e3   :  { %v849_v0 = vpop.f32.mrf.mxu3 }
 0x1e4   :  { %v850_v39 = vadd.f32 %v849_v0, %v820_v36 }
 0x1ea   :  { %v822_v15 = vpop.f32.mrf.mxu2 }
 0x1eb   :  { %v851_v44 = vpop.f32.mrf.mxu3 }
 0x1ec   :  { %v852_v52 = vadd.f32 %v851_v44, %v822_v15 }
 0x1ef   :  { %1174 = vmatmul.bf16.gmra.mxu2 %v1053_v32 }
 0x1f0   :  { %1203 = vmatmul.bf16.gmra.mxu3 %v1054_v6 }
 0x1f2   :  { %v825_v61 = vpop.f32.mrf.mxu2 }
 0x1f3   :  { %v854_v49 = vpop.f32.mrf.mxu3 }
 0x1f4   :  { %v855_v11 = vadd.f32 %v854_v49, %v825_v61  ;;  %v847_v49 = vadd.f32 %v3459_v31, %v3457_v50 }
 0x1fa   :  { %v827_v16 = vpop.f32.mrf.mxu2 }
 0x1fb   :  { %v856_v3 = vpop.f32.mrf.mxu3 }
 0x1fc   :  { %v857_v56 = vadd.f32 %v856_v3, %v827_v16 }
 0x202   :  { %v964_v19 = vpop.f32.mrf.mxu2 }
 0x203   :  { %v965_v18 = vadd.f32 %v964_v19, %v840_v2  ;;  %v993_v22 = vpop.f32.mrf.mxu3 }
 0x205   :  { %v994_v24 = vadd.f32 %v993_v22, %v965_v18  ;;  %v2468_v18 = vld [vmem:[%s3984_s5 + $0xe0] sm:$0xf]  ;;  %v2775_v22 = vld [vmem:[%s3984_s5 + $0xe4] sm:$0xf0] }
 0x20a   :  { %v966_v13 = vpop.f32.mrf.mxu2 }
 0x20b   :  { %v995_v25 = vpop.f32.mrf.mxu3  ;;  %v967_v2 = vadd.f32 %v966_v13, %v842_v17  ;;  %v2452_v17 = vld [vmem:[%s3984_s5 + $0xc0] sm:$0xf] }
 0x20d   :  { %v996_v0 = vadd.f32 %v995_v25, %v967_v2  ;;  %v2469_v25 = vor.u32 %v2775_v22, %v2468_v18  ;;  %v2793_v18 = vld [vmem:[%s3984_s5 + $0x174] sm:$0xf0] }
 0x20f   :  { %1748 = vmatpush.bf16.msrb.mxu1 %v2469_v25  ;;  %v2809_v25 = vld [vmem:[%s3984_s5 + $0x1f4] sm:$0xf0] }
 0x212   :  { %v969_v14 = vpop.f32.mrf.mxu2 }
 0x213   :  { %v970_v53 = vadd.f32 %v969_v14, %v845_v48  ;;  %v998_v47 = vpop.f32.mrf.mxu3 }
 0x215   :  { %v999_v60 = vadd.f32 %v998_v47, %v970_v53 }
 0x21a   :  { %v971_v58 = vpop.f32.mrf.mxu2 }
 0x21b   :  { %v3469_v21 = vpop.f32.mrf.mxu3  ;;  %v972_v16 = vadd.f32 %v971_v58, %v847_v49  ;;  %v2372_v49 = vld [vmem:[%s3984_s5 + $0x20] sm:$0xf] }
 0x21d   :  { %v1001_v50 = vadd.f32 %v3469_v21, %v972_v16  ;;  %v2396_v21 = vld [vmem:[%s3984_s5 + $0x50] sm:$0xf]  ;;  %v2436_v16 = vld [vmem:[%s3984_s5 + $0xa0] sm:$0xf] }
 0x222   :  { %v974_v8 = vpop.f32.mrf.mxu2 }
 0x223   :  { %v975_v33 = vadd.f32 %v974_v8, %v850_v39  ;;  %v1003_v34 = vpop.f32.mrf.mxu3 }
 0x225   :  { %v3471_v35 = vadd.f32 %v1003_v34, %v975_v33  ;;  %v2757_v34 = vld [vmem:[%s3984_s5 + $0x54] sm:$0xf0] }
 0x22a   :  { %v976_v9 = vpop.f32.mrf.mxu2 }
 0x22b   :  { %v977_v37 = vadd.f32 %v976_v9, %v852_v52  ;;  %v1005_v26 = vpop.f32.mrf.mxu3  ;;  %v2460_v9 = vld [vmem:[%s3984_s5 + $0xd0] sm:$0xf] }
 0x22d   :  { %v3473_v38 = vadd.f32 %v1005_v26, %v977_v37  ;;  %v2773_v37 = vld [vmem:[%s3984_s5 + $0xd4] sm:$0xf0] }
 0x232   :  { %v979_v40 = vpop.f32.mrf.mxu2 }
 0x233   :  { %v980_v55 = vadd.f32 %v979_v40, %v855_v11  ;;  %v1008_v42 = vpop.f32.mrf.mxu3  ;;  %v2397_v40 = vor.u32 %v2757_v34, %v2396_v21  ;;  %v2524_v34 = vld [vmem:[%s3984_s5 + $0x150] sm:$0xf] }
 0x235   :  { %v3475_v28 = vadd.f32 %v1008_v42, %v980_v55  ;;  %v2461_v55 = vor.u32 %v2773_v37, %v2460_v9  ;;  %1736 = vmatpush.bf16.msrb.mxu0 %v2397_v40  ;;  %v2789_v9 = vld [vmem:[%s3984_s5 + $0x154] sm:$0xf0]  ;;  %v2364_v37 = vld [vmem:[%s3984_s5 + $0x10] sm:$0xf] }
 0x236   :  { %v2749_v40 = vld [vmem:[%s3984_s5 + $0x14] sm:$0xf0] }
 0x237   :  { %1749 = vmatpush.bf16.msrb.mxu1 %v2461_v55  ;;  %v2588_v55 = vld [vmem:[%s3984_s5 + $0x1d0] sm:$0xf] }
 0x23a   :  { %v981_v43 = vpop.f32.mrf.mxu2 }
 0x23b   :  { %v982_v63 = vadd.f32 %v981_v43, %v857_v56  ;;  %v1010_v5 = vpop.f32.mrf.mxu3 }
 0x23d   :  { %v3483_v46 = vadd.f32 %v1010_v5, %v982_v63 }
 0x242   :  { %v1160_v54 = vpop.f32.mrf.mxu2 }
 0x243   :  { %v1189_v1 = vpop.f32.mrf.mxu3 }
 0x244   :  { %v1190_v27 = vadd.f32 %v1189_v1, %v1160_v54 }
 0x246   :  { %v1209_v12 = vadd.f32 %v1190_v27, %v994_v24  ;;  %v2388_v27 = vld [vmem:[%s3984_s5 + $0x40] sm:$0xf] }
 0x248   :  { %v1221_v45 = vadd.f32 %v3494_v57, %v1209_v12  ;;  %v2771_v12 = vld [vmem:[%s3984_s5 + $0xc4] sm:$0xf0] }
 0x24a   :  { %v1229_v7 = vmax.f32 %v1221_v45, 0.0  ;;  %v1162_v48 = vpop.f32.mrf.mxu2 }
 0x24b   :  { %v1191_v36 = vpop.f32.mrf.mxu3 }
 0x24c   :  { %1240 = vst.sshfl [vmem:[#allocation1] sm:$0xff pattern:$0x75316420] %v1229_v7  ;;  %v1192_v39 = vadd.f32 %v1191_v36, %v1162_v48 }
 0x24d   :  { %1238 = vst.msk [vmem:[#allocation3] sm:$0xf] %vm1237_vm3, %v1229_v7  ;;  %v2453_v7 = vor.u32 %v2771_v12, %v2452_v17  ;;  %v2801_v17 = vld [vmem:[%s3984_s5 + $0x1b4] sm:$0xf0] }
 0x24e   :  { %v1210_v15 = vadd.f32 %v1192_v39, %v996_v0 }
 0x24f   :  { %1750 = vmatpush.bf16.msrb.mxu1 %v2453_v7  ;;  %v2783_v7 = vld [vmem:[%s3984_s5 + $0x124] sm:$0xf0] }
 0x250   :  { %v1222_v44 = vadd.f32 %v3494_v57, %v1210_v15 }
 0x252   :  { %v1165_v51 = vpop.f32.mrf.mxu2  ;;  %v1230_v52 = vmax.f32 %v1222_v44, 0.0 }
 0x253   :  { %v1194_v32 = vpop.f32.mrf.mxu3  ;;  %v1242_v6 = vld [vmem:[#allocation1 + $0x1] ss:$2 sm:$0xff] }
 0x254   :  { %v1195_v61 = vadd.f32 %v1194_v32, %v1165_v51  ;;  %1243 = vrot.lane.b32.xlu2 %v1242_v6, %s2864_s29  ;;  %1254 = vst.sshfl [vmem:[#allocation1] sm:$0xff pattern:$0x75316420] %v1230_v52  ;;  %v2769_v6 = vld [vmem:[%s3984_s5 + $0xb4] sm:$0xf0] }
 0x256   :  { %v1211_v11 = vadd.f32 %v1195_v61, %v999_v60 }
 0x258   :  { %v1223_v3 = vadd.f32 %v3494_v57, %v1211_v11  ;;  %v2751_v11 = vld [vmem:[%s3984_s5 + $0x24] sm:$0xf0] }
 0x25a   :  { %v1231_v56 = vmax.f32 %v1223_v3, 0.0  ;;  %v1167_v19 = vpop.f32.mrf.mxu2  ;;  %v2373_v3 = vor.u32 %v2751_v11, %v2372_v49 }
 0x25b   :  { %v1196_v24 = vpop.f32.mrf.mxu3  ;;  %v3517_v13 = vld [vmem:[#allocation1 + $0x1] ss:$2 sm:$0xff] }
 0x25c   :  { %v1197_v31 = vadd.f32 %v1196_v24, %v1167_v19  ;;  %1249 = vrot.lane.b32.xlu2 %v1230_v52, %s2865_s13  ;;  %1264 = vst.sshfl [vmem:[#allocation1] sm:$0xff pattern:$0x75316420] %v1231_v56  ;;  %v2444_v52 = vld [vmem:[%s3984_s5 + $0xb0] sm:$0xf] }
 0x25d   :  { %1262 = vst.msk [vmem:[#allocation3 + $0x4] sm:$0xf] %vm1237_vm3, %v1231_v56  ;;  %v2445_v61 = vor.u32 %v2769_v6, %v2444_v52  ;;  %v2767_v56 = vld [vmem:[%s3984_s5 + $0xa4] sm:$0xf0]  ;;  %v2540_v19 = vld [vmem:[%s3984_s5 + $0x170] sm:$0xf] }
 0x25e   :  { %v1212_v14 = vadd.f32 %v1197_v31, %v1001_v50  ;;  %v2437_v22 = vor.u32 %v2767_v56, %v2436_v16  ;;  %v2541_v24 = vor.u32 %v2793_v18, %v2540_v19  ;;  %v2532_v50 = vld [vmem:[%s3984_s5 + $0x160] sm:$0xf]  ;;  %v2792_v6 = vld [vmem:[%s3984_s5 + $0x174] sm:$0xf]  ;;  %v2790_v19 = vld [vmem:[%s3984_s5 + $0x164] sm:$0xf] }
 0x25f   :  { %1751 = vmatpush.bf16.msrb.mxu1 %v2445_v61  ;;  %v2542_v61 = vld [vmem:[%s3984_s5 + $0x178] sm:$0xf0]  ;;  %v2808_v16 = vld [vmem:[%s3984_s5 + $0x1f4] sm:$0xf]  ;;  %v2534_v18 = vld [vmem:[%s3984_s5 + $0x168] sm:$0xf0] }
 0x260   :  { %v3523_v53 = vadd.f32 %v3494_v57, %v1212_v14  ;;  %v2791_v14 = vld [vmem:[%s3984_s5 + $0x164] sm:$0xf0]  ;;  %1760 = vmatpush.bf16.msrb.mxu2 %v2541_v24  ;;  %v2545_v11 = vor.u32 %v2792_v6, %v2542_v61  ;;  %v2782_v6 = vld [vmem:[%s3984_s5 + $0x124] sm:$0xf]  ;;  %v2502_v61 = vld [vmem:[%s3984_s5 + $0x128] sm:$0xf0] }
 0x262   :  { %v1232_v47 = vmax.f32 %v3523_v53, 0.0  ;;  %v1170_v60 = vpop.f32.mrf.mxu2  ;;  %v2596_v53 = vld [vmem:[%s3984_s5 + $0x1e0] sm:$0xf] }
 0x263   :  { %v1199_v58 = vpop.f32.mrf.mxu3  ;;  %v1266_v8 = vld [vmem:[#allocation1 + $0x1] ss:$2 sm:$0xff]  ;;  %1752 = vmatpush.bf16.msrb.mxu1 %v2437_v22 }
 0x264   :  { %v1200_v33 = vadd.f32 %v1199_v58, %v1170_v60  ;;  %1267 = vrot.lane.b32.xlu2 %v1266_v8, %s2864_s29  ;;  %1276 = vst.sshfl [vmem:[#allocation1] sm:$0xff pattern:$0x75316420] %v1232_v47  ;;  %v2533_v60 = vor.u32 %v2791_v14, %v2532_v50  ;;  %v2806_v22 = vld [vmem:[%s3984_s5 + $0x1e4] sm:$0xf] }
 0x265   :  { %v2598_v50 = vld [vmem:[%s3984_s5 + $0x1e8] sm:$0xf0]  ;;  %v2356_v14 = vld [vmem:[%s3984_s5] sm:$0xf] }
 0x266   :  { %v1213_v26 = vadd.f32 %v1200_v33, %v3471_v35  ;;  %1761 = vmatpush.bf16.msrb.mxu2 %v2533_v60  ;;  %v2420_v60 = vld [vmem:[%s3984_s5 + $0x80] sm:$0xf] }
 0x268   :  { %v1225_v42 = vadd.f32 %v3494_v57, %v1213_v26  ;;  %v2525_v26 = vor.u32 %v2789_v9, %v2524_v34  ;;  %v2776_v34 = vld [vmem:[%s3984_s5 + $0xf4] sm:$0xf]  ;;  %v2478_v9 = vld [vmem:[%s3984_s5 + $0xf8] sm:$0xf0] }
 0x26a   :  { %v1233_v43 = vmax.f32 %v1225_v42, 0.0  ;;  %v1172_v62 = vpop.f32.mrf.mxu2  ;;  %v2805_v42 = vld [vmem:[%s3984_s5 + $0x1d4] sm:$0xf0]  ;;  %1762 = vmatpush.bf16.msrb.mxu2 %v2525_v26  ;;  %v2481_v26 = vor.u32 %v2776_v34, %v2478_v9  ;;  %v2438_v34 = vld [vmem:[%s3984_s5 + $0xa8] sm:$0xf0] }
 0x26b   :  { %v1201_v4 = vpop.f32.mrf.mxu3  ;;  %v1278_v63 = vld [vmem:[#allocation1 + $0x1] ss:$2 sm:$0xff] }
 0x26c   :  { %v1202_v5 = vadd.f32 %v1201_v4, %v1172_v62  ;;  %1279 = vrot.lane.b32.xlu2 %v1278_v63, %s2866_s1  ;;  %1285 = vst.sshfl [vmem:[#allocation1] sm:$0xff pattern:$0x75316420] %v1233_v43  ;;  %v2589_v62 = vor.u32 %v2805_v42, %v2588_v55  ;;  %v2428_v4 = vld [vmem:[%s3984_s5 + $0x90] sm:$0xf] }
 0x26d   :  { %1283 = vst.msk [vmem:[#allocation3 + $0x8] sm:$0xf] %vm1237_vm3, %v1233_v43  ;;  %v2365_v43 = vor.u32 %v2749_v40, %v2364_v37  ;;  %v2765_v63 = vld [vmem:[%s3984_s5 + $0x94] sm:$0xf0]  ;;  %v2788_v40 = vld [vmem:[%s3984_s5 + $0x154] sm:$0xf] }
 0x26e   :  { %v1214_v23 = vadd.f32 %v1202_v5, %v3473_v38  ;;  %v2755_v38 = vld [vmem:[%s3984_s5 + $0x44] sm:$0xf0]  ;;  %v2429_v5 = vor.u32 %v2765_v63, %v2428_v4  ;;  %v2526_v55 = vld [vmem:[%s3984_s5 + $0x158] sm:$0xf0]  ;;  %v2804_v42 = vld [vmem:[%s3984_s5 + $0x1d4] sm:$0xf] }
 0x26f   :  { %v2389_v45 = vor.u32 %v2755_v38, %v2388_v27  ;;  %v2572_v38 = vld [vmem:[%s3984_s5 + $0x1b0] sm:$0xf]  ;;  %v2758_v63 = vld [vmem:[%s3984_s5 + $0x64] sm:$0xf] }
 0x270   :  { %v1226_v35 = vadd.f32 %v3494_v57, %v1214_v23  ;;  %1753 = vmatpush.bf16.msrb.mxu1 %v2429_v5  ;;  %v2516_v23 = vld [vmem:[%s3984_s5 + $0x140] sm:$0xf]  ;;  %v2406_v5 = vld [vmem:[%s3984_s5 + $0x68] sm:$0xf0] }
 0x271   :  { %1737 = vmatpush.bf16.msrb.mxu0 %v2389_v45  ;;  %v2500_v45 = vld [vmem:[%s3984_s5 + $0x120] sm:$0xf] }
 0x272   :  { %v1175_v54 = vpop.f32.mrf.mxu2  ;;  %v1234_v30 = vmax.f32 %v1226_v35, 0.0  ;;  %v2787_v35 = vld [vmem:[%s3984_s5 + $0x144] sm:$0xf0] }
 0x273   :  { %v1204_v59 = vpop.f32.mrf.mxu3  ;;  %v1287_v1 = vld [vmem:[#allocation1 + $0x1] ss:$2 sm:$0xff] }
 0x274   :  { %v1205_v10 = vadd.f32 %v1204_v59, %v1175_v54  ;;  %1293 = vrot.lane.b32.xlu1 %v1234_v30, %s2865_s13  ;;  %1288 = vrot.lane.b32.xlu0 %v1287_v1, %s2864_s29  ;;  %1297 = vst.sshfl [vmem:[#allocation1] sm:$0xff pattern:$0x75316420] %v1234_v30  ;;  %v2580_v54 = vld [vmem:[%s3984_s5 + $0x1c0] sm:$0xf]  ;;  %v2517_v30 = vor.u32 %v2787_v35, %v2516_v23 }
 0x275   :  { %v2803_v59 = vld [vmem:[%s3984_s5 + $0x1c4] sm:$0xf0]  ;;  %v2508_v1 = vld [vmem:[%s3984_s5 + $0x130] sm:$0xf]  ;;  %v2774_v23 = vld [vmem:[%s3984_s5 + $0xe4] sm:$0xf] }
 0x276   :  { %v1215_v2 = vadd.f32 %v1205_v10, %v3475_v28  ;;  %v2785_v10 = vld [vmem:[%s3984_s5 + $0x134] sm:$0xf0]  ;;  %v2581_v27 = vor.u32 %v2803_v59, %v2580_v54  ;;  %1763 = vmatpush.bf16.msrb.mxu2 %v2517_v30  ;;  %v2409_v54 = vor.u32 %v2758_v63, %v2406_v5  ;;  %v2470_v30 = vld [vmem:[%s3984_s5 + $0xe8] sm:$0xf0]  ;;  %v2786_v59 = vld [vmem:[%s3984_s5 + $0x144] sm:$0xf] }
 0x277   :  { %v2509_v12 = vor.u32 %v2785_v10, %v2508_v1  ;;  %v2518_v1 = vld [vmem:[%s3984_s5 + $0x148] sm:$0xf0]  ;;  %v2473_v10 = vor.u32 %v2774_v23, %v2470_v30  ;;  %v2748_v23 = vld [vmem:[%s3984_s5 + $0x14] sm:$0xf] }
 0x278   :  { %v1227_v48 = vadd.f32 %v3494_v57, %v1215_v2  ;;  %v2573_v2 = vor.u32 %v2801_v17, %v2572_v38  ;;  %v2802_v38 = vld [vmem:[%s3984_s5 + $0x1c4] sm:$0xf]  ;;  %v2582_v17 = vld [vmem:[%s3984_s5 + $0x1c8] sm:$0xf0]  ;;  %v2764_v30 = vld [vmem:[%s3984_s5 + $0x94] sm:$0xf] }
 0x27a   :  { %v1235_v36 = vmax.f32 %v1227_v48, 0.0  ;;  %v1177_v0 = vpop.f32.mrf.mxu2  ;;  %1764 = vmatpush.bf16.msrb.mxu2 %v2509_v12  ;;  %v2564_v48 = vld [vmem:[%s3984_s5 + $0x1a0] sm:$0xf]  ;;  %v2585_v12 = vor.u32 %v2802_v38, %v2582_v17  ;;  %v2762_v38 = vld [vmem:[%s3984_s5 + $0x84] sm:$0xf] }
 0x27b   :  { %v1206_v39 = vpop.f32.mrf.mxu3  ;;  %v1299_v15 = vld [vmem:[#allocation1 + $0x1] ss:$2 sm:$0xff] }
 0x27c   :  { %v1207_v41 = vadd.f32 %v1206_v39, %v1177_v0  ;;  %1300 = vrot.lane.b32.xlu0 %v1299_v15, %s2866_s1  ;;  %1306 = vst.sshfl [vmem:[#allocation1] sm:$0xff pattern:$0x75316420] %v1235_v36  ;;  %v2799_v0 = vld [vmem:[%s3984_s5 + $0x1a4] sm:$0xf0] }
 0x27d   :  { %1304 = vst.msk [vmem:[#allocation3 + $0xc] sm:$0xf] %vm1237_vm3, %v1235_v36  ;;  %v2501_v36 = vor.u32 %v2783_v7, %v2500_v45  ;;  %v2492_v39 = vld [vmem:[%s3984_s5 + $0x110] sm:$0xf]  ;;  %v2781_v15 = vld [vmem:[%s3984_s5 + $0x114] sm:$0xf0] }
 0x27e   :  { %v1216_v29 = vadd.f32 %v1207_v41, %v3483_v46  ;;  %v2380_v46 = vld [vmem:[%s3984_s5 + $0x30] sm:$0xf]  ;;  %v2565_v41 = vor.u32 %v2799_v0, %v2564_v48  ;;  %v2398_v45 = vld [vmem:[%s3984_s5 + $0x58] sm:$0xf0]  ;;  %v2772_v7 = vld [vmem:[%s3984_s5 + $0xd4] sm:$0xf] }
 0x27f   :  { %1765 = vmatpush.bf16.msrb.mxu2 %v2501_v36  ;;  %v2462_v36 = vld [vmem:[%s3984_s5 + $0xd8] sm:$0xf0]  ;;  %v2784_v0 = vld [vmem:[%s3984_s5 + $0x134] sm:$0xf]  ;;  %v2422_v17 = vld [vmem:[%s3984_s5 + $0x88] sm:$0xf0] }
 0x280   :  { %v1228_v28 = vadd.f32 %v3494_v57, %v1216_v29  ;;  %v2753_v57 = vld [vmem:[%s3984_s5 + $0x34] sm:$0xf0]  ;;  %v2556_v29 = vld [vmem:[%s3984_s5 + $0x190] sm:$0xf] }
 0x281   :  { %v2381_v32 = vor.u32 %v2753_v57, %v2380_v46  ;;  %v2779_v46 = vld [vmem:[%s3984_s5 + $0x104] sm:$0xf0]  ;;  %v2548_v57 = vld [vmem:[%s3984_s5 + $0x180] sm:$0xf] }
 0x282   :  { %v1236_v20 = vmax.f32 %v1228_v28, 0.0  ;;  %v2797_v28 = vld [vmem:[%s3984_s5 + $0x194] sm:$0xf0] }
 0x283   :  { %v1308_v44 = vld [vmem:[#allocation1 + $0x1] ss:$2 sm:$0xff]  ;;  %1738 = vmatpush.bf16.msrb.mxu0 %v2381_v32 }
 0x284   :  { %1314 = vrot.lane.b32.xlu1 %v1236_v20, %s2865_s13  ;;  %1309 = vrot.lane.b32.xlu0 %v1308_v44, %s2864_s29  ;;  %1318 = vst.sshfl [vmem:[#allocation1] sm:$0xff pattern:$0x75316420] %v1236_v20  ;;  %v2493_v20 = vor.u32 %v2781_v15, %v2492_v39  ;;  %v2557_v44 = vor.u32 %v2797_v28, %v2556_v29  ;;  %v2795_v32 = vld [vmem:[%s3984_s5 + $0x184] sm:$0xf0] }
 0x285   :  { %v2549_v49 = vor.u32 %v2795_v32, %v2548_v57  ;;  %v2510_v39 = vld [vmem:[%s3984_s5 + $0x138] sm:$0xf0]  ;;  %v2465_v15 = vor.u32 %v2772_v7, %v2462_v36  ;;  %v2800_v29 = vld [vmem:[%s3984_s5 + $0x1b4] sm:$0xf]  ;;  %v2454_v57 = vld [vmem:[%s3984_s5 + $0xc8] sm:$0xf0] }
 0x286   :  { %1766 = vmatpush.bf16.msrb.mxu2 %v2493_v20  ;;  %v2574_v28 = vld [vmem:[%s3984_s5 + $0x1b8] sm:$0xf0]  ;;  %v2754_v20 = vld [vmem:[%s3984_s5 + $0x44] sm:$0xf] }
 0x287   :  { %1739 = vmatpush.bf16.msrb.mxu0 %v2373_v3  ;;  %v2606_v3 = vld [vmem:[%s3984_s5 + $0x1f8] sm:$0xf0] }
 0x288   :  { %v2609_v56 = vor.u32 %v2808_v16, %v2606_v3  ;;  %v2505_v3 = vor.u32 %v2782_v6, %v2502_v61  ;;  %v2812_v6 = vld [vmem:[%s3986_s7 + $0x10] sm:$0xff] }
 0x289   :  { %v2824_v61 = vld [vmem:[%s3986_s7 + $0x70] sm:$0xff] }
 0x28b   :  { %v1320_v51 = vld [vmem:[#allocation1 + $0x1] ss:$2 sm:$0xff]  ;;  %1740 = vmatpush.bf16.msrb.mxu0 %v2365_v43  ;;  %v2529_v43 = vor.u32 %v2788_v40, %v2526_v55 }
 0x28c   :  { %1272 = vrot.lane.b32.xlu0 %v1232_v47, %s2865_s13  ;;  %1321 = vrot.lane.b32.xlu1 %v1320_v51, %s2866_s1  ;;  %v2807_v47 = vld [vmem:[%s3984_s5 + $0x1e4] sm:$0xf0]  ;;  %v2484_v51 = vld [vmem:[%s3984_s5 + $0x100] sm:$0xf] }
 0x28d   :  { %v2597_v58 = vor.u32 %v2807_v47, %v2596_v53  ;;  %v2485_v52 = vor.u32 %v2779_v46, %v2484_v51  ;;  %v2747_v53 = vld [vmem:[%s3984_s5 + $0x4] sm:$0xf0]  ;;  %v2390_v51 = vld [vmem:[%s3984_s5 + $0x48] sm:$0xf0]  ;;  %v2770_v46 = vld [vmem:[%s3984_s5 + $0xc4] sm:$0xf] }
 0x28e   :  { %v2357_v47 = vor.u32 %v2747_v53, %v2356_v14  ;;  %v2457_v32 = vor.u32 %v2770_v46, %v2454_v57  ;;  %v2486_v40 = vld [vmem:[%s3984_s5 + $0x108] sm:$0xf0]  ;;  %v2794_v55 = vld [vmem:[%s3984_s5 + $0x184] sm:$0xf] }
 0x28f   :  { %1767 = vmatpush.bf16.msrb.mxu2 %v2485_v52  ;;  %v2393_v52 = vor.u32 %v2754_v20, %v2390_v51  ;;  %v2816_v51 = vld [vmem:[%s3986_s7 + $0x30] sm:$0xff]  ;;  %v2815_v46 = vld [vmem:[%s3986_s7 + $0x28] sm:$0xff]  ;;  %v2814_v57 = vld [vmem:[%s3986_s7 + $0x20] sm:$0xff] }
 0x290   :  { %1741 = vmatpush.bf16.msrb.mxu0 %v2357_v47  ;;  %v2796_v47 = vld [vmem:[%s3984_s5 + $0x194] sm:$0xf] }
 0x293   :  { %1812 = vmatpush.bf16.msra.mxu2 %v2545_v11 }
 0x294   :  { %1257 = vrot.lane.b32.xlu1 %v3517_v13, %s2866_s1  ;;  %v2604_v13 = vld [vmem:[%s3984_s5 + $0x1f0] sm:$0xf] }
 0x295   :  { %v2605_v31 = vor.u32 %v2809_v25, %v2604_v13  ;;  %v2537_v25 = vor.u32 %v2790_v19, %v2534_v18  ;;  %v2752_v18 = vld [vmem:[%s3984_s5 + $0x34] sm:$0xf] }
 0x297   :  { %1773 = vmatpush.bf16.msrb.mxu3 %v2605_v31  ;;  %v2601_v31 = vor.u32 %v2806_v22, %v2598_v50  ;;  %1813 = vmatpush.bf16.msra.mxu2 %v2537_v25  ;;  %v2382_v22 = vld [vmem:[%s3984_s5 + $0x38] sm:$0xf0]  ;;  %v2780_v50 = vld [vmem:[%s3984_s5 + $0x114] sm:$0xf] }
 0x298   :  { %v2446_v25 = vld [vmem:[%s3984_s5 + $0xb8] sm:$0xf0] }
 0x29b   :  { %1774 = vmatpush.bf16.msrb.mxu3 %v2597_v58  ;;  %v2763_v58 = vld [vmem:[%s3984_s5 + $0x84] sm:$0xf0]  ;;  %1814 = vmatpush.bf16.msra.mxu2 %v2529_v43 }
 0x29f   :  { %1775 = vmatpush.bf16.msrb.mxu3 %v2589_v62  ;;  %v2590_v62 = vld [vmem:[%s3984_s5 + $0x1d8] sm:$0xf0] }
 0x2a0   :  { %v2593_v4 = vor.u32 %v2804_v42, %v2590_v62 }
 0x2a3   :  { %1776 = vmatpush.bf16.msrb.mxu3 %v2581_v27  ;;  %v2521_v27 = vor.u32 %v2786_v59, %v2518_v1  ;;  %v2430_v59 = vld [vmem:[%s3984_s5 + $0x98] sm:$0xf0] }
 0x2a4   :  { %v2433_v1 = vor.u32 %v2764_v30, %v2430_v59 }
 0x2a5   :  { %1815 = vmatpush.bf16.msra.mxu2 %v2521_v27  ;;  %v2358_v27 = vld [vmem:[%s3984_s5 + $0x8] sm:$0xf0] }
 0x2a7   :  { %1777 = vmatpush.bf16.msrb.mxu3 %v2573_v2  ;;  %v2756_v2 = vld [vmem:[%s3984_s5 + $0x54] sm:$0xf] }
 0x2a8   :  { %v2401_v48 = vor.u32 %v2756_v2, %v2398_v45  ;;  %v2425_v2 = vor.u32 %v2762_v38, %v2422_v17  ;;  %v2832_v38 = vld [vmem:[%s3987_s8] ss:$0 sm:$0xff]  ;;  %s2867_s8 = smov [#allocation4]  }
 0x2a9   :  { %s2031_s23 = sshll.u32 %s2867_s8, 4  ;;  %s2032_s23 = int_to_ptr.vmem [resolvable:$true] %s2031_s23 }
 0x2ab   :  { %1778 = vmatpush.bf16.msrb.mxu3 %v2565_v41  ;;  %v2513_v41 = vor.u32 %v2784_v0, %v2510_v39 }
 0x2ad   :  { %1816 = vmatpush.bf16.msra.mxu2 %v2513_v41  ;;  %v2817_v41 = vld [vmem:[%s3986_s7 + $0x38] sm:$0xff] }
 0x2ae   :  { %v1244_v8 = vpop.permute.xlu2 %1243 }
 0x2af   :  { %1247 = vst.msk [vmem:[#allocation3] sm:$0xf] %vm1246_vm4, %v1244_v8  ;;  %1779 = vmatpush.bf16.msrb.mxu3 %v2557_v44  ;;  %v2760_v8 = vld [vmem:[%s3984_s5 + $0x74] sm:$0xf]  ;;  %v2577_v44 = vor.u32 %v2800_v29, %v2574_v28 }
 0x2b1   :  { %1817 = vmatpush.bf16.msra.mxu2 %v2505_v3  ;;  %v2822_v3 = vld [vmem:[%s3986_s7 + $0x60] sm:$0xff] }
 0x2b3   :  { %1780 = vmatpush.bf16.msrb.mxu3 %v2549_v49  ;;  %v2798_v49 = vld [vmem:[%s3984_s5 + $0x1a4] sm:$0xf] }
 0x2b6   :  { %v1250_v33 = vpop.permute.xlu2 %1249 }
 0x2b7   :  { %1253 = vst.msk [vmem:[#allocation3] sm:$0xf] %vm1252_vm5, %v1250_v33  ;;  %1825 = vmatpush.bf16.msra.mxu3 %v2609_v56  ;;  %v2421_v33 = vor.u32 %v2763_v58, %v2420_v60  ;;  %v2566_v56 = vld [vmem:[%s3984_s5 + $0x1a8] sm:$0xf0]  ;;  %v2558_v60 = vld [vmem:[%s3984_s5 + $0x198] sm:$0xf0] }
 0x2b8   :  { %v2569_v19 = vor.u32 %v2798_v49, %v2566_v56  ;;  %v2750_v58 = vld [vmem:[%s3984_s5 + $0x24] sm:$0xf]  ;;  %v2811_v49 = vld [vmem:[%s3986_s7 + $0x8] sm:$0xff]  ;;  %v2821_v56 = vld [vmem:[%s3986_s7 + $0x58] sm:$0xff] }
 0x2b9   :  { %1754 = vmatpush.bf16.msrb.mxu1 %v2421_v33  ;;  %v2374_v33 = vld [vmem:[%s3984_s5 + $0x28] sm:$0xf0] }
 0x2ba   :  { %v2377_v9 = vor.u32 %v2750_v58, %v2374_v33 }
 0x2bb   :  { %1826 = vmatpush.bf16.msra.mxu3 %v2601_v31  ;;  %v2494_v31 = vld [vmem:[%s3984_s5 + $0x118] sm:$0xf0] }
 0x2bc   :  { %v2497_v53 = vor.u32 %v2780_v50, %v2494_v31 }
 0x2bd   :  { %1799 = vmatpush.bf16.msra.mxu1 %v2481_v26  ;;  %v2778_v26 = vld [vmem:[%s3984_s5 + $0x104] sm:$0xf] }
 0x2be   :  { %v1268_v21 = vpop.permute.xlu2 %1267  ;;  %1818 = vmatpush.bf16.msra.mxu2 %v2497_v53  ;;  %v2489_v62 = vor.u32 %v2778_v26, %v2486_v40 }
 0x2bf   :  { %1270 = vst.msk [vmem:[#allocation3 + $0x4] sm:$0xf] %vm1246_vm4, %v1268_v21  ;;  %v2414_v21 = vld [vmem:[%s3984_s5 + $0x78] sm:$0xf0]  ;;  %1827 = vmatpush.bf16.msra.mxu3 %v2593_v4  ;;  %v2550_v4 = vld [vmem:[%s3984_s5 + $0x188] sm:$0xf0] }
 0x2c0   :  { %v2417_v37 = vor.u32 %v2760_v8, %v2414_v21  ;;  %v2561_v8 = vor.u32 %v2796_v47, %v2558_v60  ;;  %v2766_v21 = vld [vmem:[%s3984_s5 + $0xa4] sm:$0xf]  ;;  %v2553_v5 = vor.u32 %v2794_v55, %v2550_v4 }
 0x2c1   :  { %1800 = vmatpush.bf16.msra.mxu1 %v2473_v10  ;;  %v2746_v10 = vld [vmem:[%s3984_s5 + $0x4] sm:$0xf] }
 0x2c2   :  { %1786 = vmatpush.bf16.msra.mxu0 %v2417_v37  ;;  %v2441_v37 = vor.u32 %v2766_v21, %v2438_v34  ;;  %1819 = vmatpush.bf16.msra.mxu2 %v2489_v62 }
 0x2c3   :  { %1828 = vmatpush.bf16.msra.mxu3 %v2585_v12  ;;  %v2361_v12 = vor.u32 %v2746_v10, %v2358_v27 }
 0x2c5   :  { %1801 = vmatpush.bf16.msra.mxu1 %v2465_v15 }
 0x2c6   :  { %1787 = vmatpush.bf16.msra.mxu0 %v2409_v54  ;;  %v1280_v63 = vpop.permute.xlu2 %1279 }
 0x2c7   :  { %1829 = vmatpush.bf16.msra.mxu3 %v2577_v44 }
 0x2c9   :  { %1802 = vmatpush.bf16.msra.mxu1 %v2457_v32  ;;  %v2825_v32 = vld [vmem:[%s3986_s7 + $0x78] sm:$0xff] }
 0x2ca   :  { %1788 = vmatpush.bf16.msra.mxu0 %v2401_v48 }
 0x2cb   :  { %1830 = vmatpush.bf16.msra.mxu3 %v2569_v19  ;;  %v2820_v19 = vld [vmem:[%s3986_s7 + $0x50] sm:$0xff] }
 0x2ce   :  { %1789 = vmatpush.bf16.msra.mxu0 %v2393_v52  ;;  %v2813_v52 = vld [vmem:[%s3986_s7 + $0x18] sm:$0xff] }
 0x2cf   :  { %1831 = vmatpush.bf16.msra.mxu3 %v2561_v8 }
 0x2d3   :  { %1832 = vmatpush.bf16.msra.mxu3 %v2553_v5 }
 0x2e6   :  { %v1294_v24 = vpop.permute.xlu1 %1293  ;;  %v1289_v13 = vpop.permute.xlu0 %1288 }
 0x2e7   :  { %1291 = vst.msk [vmem:[#allocation3 + $0x8] sm:$0xf] %vm1246_vm4, %v1289_v13  ;;  %v2385_v13 = vor.u32 %v2752_v18, %v2382_v22  ;;  %v2819_v18 = vld [vmem:[%s3986_s7 + $0x48] sm:$0xff]  ;;  %v2818_v22 = vld [vmem:[%s3986_s7 + $0x40] sm:$0xff] }
 0x2e8   :  { %1296 = vst.msk [vmem:[#allocation3 + $0x8] sm:$0xf] %vm1252_vm5, %v1294_v24  ;;  %v2768_v24 = vld [vmem:[%s3984_s5 + $0xb4] sm:$0xf] }
 0x2e9   :  { %v2449_v14 = vor.u32 %v2768_v24, %v2446_v25  ;;  %1790 = vmatpush.bf16.msra.mxu0 %v2385_v13  ;;  %v1408_v24 = vld [vmem:[%s3985_s6] sm:$0x3] }
 0x2ea   :  { %v1410_v13 = vperm.slane %v1408_v24, 0  ;;  %v1411_v26 = vperm.slane %v1408_v24, 1 }
 0x2eb   :  { %1803 = vmatpush.bf16.msra.mxu1 %v2449_v14 }
 0x2ed   :  { %1791 = vmatpush.bf16.msra.mxu0 %v2377_v9 }
 0x2ee   :  { %v1301_v35 = vpop.permute.xlu0 %1300 }
 0x2ef   :  { %1303 = vst.msk [vmem:[#allocation3 + $0x8] sm:$0xf] %vm1260_vm6, %v1301_v35  ;;  %1804 = vmatpush.bf16.msra.mxu1 %v2441_v37  ;;  %v2366_v35 = vld [vmem:[%s3984_s5 + $0x18] sm:$0xf0] }
 0x2f0   :  { %v2369_v54 = vor.u32 %v2748_v23, %v2366_v35 }
 0x2f2   :  { %1792 = vmatpush.bf16.msra.mxu0 %v2369_v54 }
 0x2f3   :  { %1805 = vmatpush.bf16.msra.mxu1 %v2433_v1 }
 0x2f6   :  { %v1315_v11 = vpop.permute.xlu1 %1314  ;;  %v1310_v16 = vpop.permute.xlu0 %1309  ;;  %1793 = vmatpush.bf16.msra.mxu0 %v2361_v12 }
 0x2f7   :  { %1312 = vst.msk [vmem:[#allocation3 + $0xc] sm:$0xf] %vm1246_vm4, %v1310_v16  ;;  %1806 = vmatpush.bf16.msra.mxu1 %v2425_v2  ;;  %v2810_v16 = vld [vmem:[%s3986_s7] sm:$0xff] }
 0x2f8   :  { %1317 = vst.msk [vmem:[#allocation3 + $0xc] sm:$0xf] %vm1252_vm5, %v1315_v11  ;;  %v2823_v11 = vld [vmem:[%s3986_s7 + $0x68] sm:$0xff] }
 0x2fe   :  { %v1273_v42 = vpop.permute.xlu0 %1272  ;;  %v1322_v43 = vpop.permute.xlu1 %1321 }
 0x2ff   :  { %1275 = vst.msk [vmem:[#allocation3 + $0x4] sm:$0xf] %vm1252_vm5, %v1273_v42 }
 0x300   :  { %1282 = vst.msk [vmem:[#allocation3 + $0x4] sm:$0xf] %vm1260_vm6, %v1280_v63 }
 0x301   :  { %1324 = vst.msk [vmem:[#allocation3 + $0xc] sm:$0xf] %vm1260_vm6, %v1322_v43 }
 0x306   :  { %v1258_v45 = vpop.permute.xlu1 %1257 }
 0x307   :  { %1261 = vst.msk [vmem:[#allocation3] sm:$0xf] %vm1260_vm6, %v1258_v45 }
 0x308   :  { %v1326_v7 = vld [vmem:[#allocation3 + $0x8] sm:$0xff] }
 0x309   :  { %1395 = vst [vmem:[#allocation1 + $0x10] ss:$2 sm:$0xff] %v1326_v7 }
 0x30e   :  { %v1325_v48 = vld [vmem:[#allocation3] sm:$0xff] }
 0x30f   :  { %1393 = vst [vmem:[#allocation1] ss:$2 sm:$0xff] %v1325_v48 }
 0x310   :  { %v1398_v36 = vld.sshfl [vmem:[#allocation1 + $0x10] sm:$0xff pattern:$0x75316420]  ;;  %v1399_v0 = vld.sshfl [vmem:[#allocation1 + $0x18] sm:$0xff pattern:$0x75316420] }
 0x311   :  { %v1406_v39 = vpack.c.bf16 %v1398_v36, %v1398_v36  ;;  %v1407_v15 = vpack.c.bf16 %v1399_v0, %v1399_v0 }
 0x313   :  { %1768 = vmatmul.bf16.vlgmr.msrb.gmra.mxu2 %v1406_v39  ;;  %1781 = vmatmul.bf16.vlgmr.msrb.gmra.mxu3 %v1407_v15 }
 0x316   :  { %v1396_v29 = vld.sshfl [vmem:[#allocation1] sm:$0xff pattern:$0x75316420]  ;;  %v1397_v28 = vld.sshfl [vmem:[#allocation1 + $0x8] sm:$0xff pattern:$0x75316420] }
 0x317   :  { %v1404_v20 = vpack.c.bf16 %v1396_v29, %v1396_v29  ;;  %v1405_v44 = vpack.c.bf16 %v1397_v28, %v1397_v28 }
 0x319   :  { %1742 = vmatmul.bf16.vlgmr.msrb.gmra.mxu0 %v1404_v20  ;;  %1755 = vmatmul.bf16.vlgmr.msrb.gmra.mxu1 %v1405_v44 }
 0x31a   :  { %1974 = vmatpush.bf16.msrb.mxu0 %v2817_v41  ;;  %1987 = vmatpush.bf16.msrb.mxu1 %v2825_v32 }
 0x31e   :  { %1975 = vmatpush.bf16.msrb.mxu0 %v2816_v51  ;;  %1988 = vmatpush.bf16.msrb.mxu1 %v2824_v61 }
 0x322   :  { %1976 = vmatpush.bf16.msrb.mxu0 %v2815_v46  ;;  %1989 = vmatpush.bf16.msrb.mxu1 %v2823_v11 }
 0x323   :  { %1820 = vmatmul.bf16.vlgmr.msra.gmra.mxu2 %v1406_v39  ;;  %1833 = vmatmul.bf16.vlgmr.msra.gmra.mxu3 %v1407_v15 }
 0x326   :  { %1977 = vmatpush.bf16.msrb.mxu0 %v2814_v57  ;;  %1990 = vmatpush.bf16.msrb.mxu1 %v2822_v3 }
 0x329   :  { %1794 = vmatmul.bf16.vlgmr.msra.gmra.mxu0 %v1404_v20  ;;  %1807 = vmatmul.bf16.vlgmr.msra.gmra.mxu1 %v1405_v44 }
 0x32a   :  { %1978 = vmatpush.bf16.msrb.mxu0 %v2813_v52  ;;  %1991 = vmatpush.bf16.msrb.mxu1 %v2821_v56 }
 0x32e   :  { %1979 = vmatpush.bf16.msrb.mxu0 %v2812_v6  ;;  %1992 = vmatpush.bf16.msrb.mxu1 %v2820_v19 }
 0x332   :  { %1980 = vmatpush.bf16.msrb.mxu0 %v2811_v49  ;;  %1993 = vmatpush.bf16.msrb.mxu1 %v2819_v18 }
 0x336   :  { %1981 = vmatpush.bf16.msrb.mxu0 %v2810_v16  ;;  %1994 = vmatpush.bf16.msrb.mxu1 %v2818_v22 }
 0x396   :  { %v1769_v25 = vpop.f32.mrf.mxu2  ;;  %v1782_v50 = vpop.f32.mrf.mxu3 }
 0x397   :  { %v1743_v31 = vpop.f32.mrf.mxu0  ;;  %v1756_v14 = vpop.f32.mrf.mxu1 }
 0x398   :  { %v1744_v53 = vadd.f32 %v1743_v31, %v1410_v13 }
 0x39a   :  { %v1757_v47 = vadd.f32 %v1756_v14, %v1744_v53 }
 0x39c   :  { %v1770_v60 = vadd.f32 %v1769_v25, %v1757_v47 }
 0x39e   :  { %v1783_v58 = vadd.f32 %v1782_v50, %v1770_v60  ;;  %v1771_v8 = vpop.f32.mrf.mxu2  ;;  %v1784_v33 = vpop.f32.mrf.mxu3 }
 0x39f   :  { %v1745_v21 = vpop.f32.mrf.mxu0  ;;  %v1758_v34 = vpop.f32.mrf.mxu1 }
 0x3a0   :  { %v1838_v9 = vmax.f32 %v1783_v58, 0.0 }
 0x3a2   :  { %v1872_v37 = vpack.c.bf16 %v1838_v9, %v1838_v9 }
 0x3a4   :  { %1982 = vmatmul.bf16.vlgmr.msrb.gmra.mxu0 %v1872_v37 }
 0x3a6   :  { %v1821_v40 = vpop.f32.mrf.mxu2  ;;  %v1834_v55 = vpop.f32.mrf.mxu3 }
 0x3a7   :  { %v1795_v42 = vpop.f32.mrf.mxu0  ;;  %v1808_v43 = vpop.f32.mrf.mxu1 }
 0x3a8   :  { %v1796_v62 = vadd.f32 %v1795_v42, %v1411_v26 }
 0x3aa   :  { %v1809_v4 = vadd.f32 %v1808_v43, %v1796_v62 }
 0x3ac   :  { %v1822_v63 = vadd.f32 %v1821_v40, %v1809_v4 }
 0x3ae   :  { %v1835_v5 = vadd.f32 %v1834_v55, %v1822_v63  ;;  %v1823_v23 = vpop.f32.mrf.mxu2  ;;  %v1836_v35 = vpop.f32.mrf.mxu3 }
 0x3af   :  { %v1797_v54 = vpop.f32.mrf.mxu0  ;;  %v1810_v30 = vpop.f32.mrf.mxu1 }
 0x3b0   :  { %v1839_v59 = vmax.f32 %v1835_v5, 0.0 }
 0x3b2   :  { %v1873_v1 = vpack.c.bf16 %v1839_v59, %v1839_v59 }
 0x3b4   :  { %1995 = vmatmul.bf16.vlgmr.msrb.gmra.mxu1 %v1873_v1 }
 0x421   :  { %v1983_v10 = vpop.f32.mrf.mxu0 }
 0x422   :  { %v1984_v17 = vadd.f32 %v2832_v38, %v1983_v10 }
 0x429   :  { %v1985_v27 = vpop.f32.mrf.mxu0 }
 0x431   :  { %v1996_v12 = vpop.f32.mrf.mxu1 }
 0x432   :  { %v1997_v2 = vadd.f32 %v1996_v12, %v1984_v17 }
 0x434   :  { %v2001_v45 = vsel %vm2000_vm7, %v1997_v2, -inf }
 0x435   :  { %2002 = vmax.xlane.f32.xlu0 %v2001_v45 }
 0x439   :  { %v1998_v7 = vpop.f32.mrf.mxu1 }
 0x4a8   :  { %v2003_v48 = vpop.xlane.xlu0 %2002 }
 0x4a9   :  { %v2004_v36 = vsub.f32 %v1997_v2, %v2003_v48 }
 0x4ab   :  { %v2005_v0 = vmul.f32 1.442695, %v2004_v36 }
 0x4ad   :  { %2833 = vpow2.f32 %v2005_v0 }
 0x4b3   :  { %v2834_v39 = vpop.eup %2833 }
 0x4b4   :  { %v2007_v15 = vsel %vm2000_vm7, %v2834_v39, 0.0 }
 0x4b5   :  { %2008 = vadd.xlane.f32.xlu1 %v2007_v15 }
 0x528   :  { %v2009_v41 = vpop.xlane.xlu1 %2008 }
 0x529   :  { %2835 = vrcp.f32 %v2009_v41  ;;  %v2021_v44 = vand.u32 2147483648, %v2009_v41  ;;  %v2019_v46 = vand.u32 2147483647, %v2009_v41  ;;  %vm2015_vm9 = vweird.f32 %v2009_v41 }
 0x52b   :  { %v2022_v52 = vor.u32 1.1754944e-38, %v2021_v44  ;;  %vm2020_vm11 = vcmp.eq.f32.partialorder %v2019_v46, 8.507059e+37 }
 0x52f   :  { %v2836_v29 = vpop.eup %2835 }
 0x530   :  { %v2011_v28 = vmul.f32 %v2836_v29, %v2009_v41  ;;  %vm2016_vm8 = vweird.f32 %v2836_v29 }
 0x531   :  { %vm2017_vm10 = vmor %vm2015_vm9, %vm2016_vm8 }
 0x532   :  { %v2012_v20 = vsub.f32 1.0, %v2011_v28 }
 0x534   :  { %v2013_v51 = vmul.f32 %v2836_v29, %v2012_v20 }
 0x536   :  { %v2014_v57 = vadd.f32 %v2836_v29, %v2013_v51 }
 0x538   :  { %v2018_v32 = vsel %vm2017_vm10, %v2836_v29, %v2014_v57 }
 0x539   :  { %v2023_v6 = vsel %vm2020_vm11, %v2022_v52, %v2018_v32 }
 0x53a   :  { %v2024_v61 = vmul.f32 %v2834_v39, %v2023_v6 }
 0x53c   :  { %2025 = vst.msk [vmem:[#allocation4] sm:$0xf] %vm2000_vm7, %v2024_v61 }
 0x53d   :  { %2036 = dma.vmem_to_hbm [thread:$0]  %s2032_s23, 64, %s2034_s4, [#allocation5]  }
 0x53e   :  { %2861 = dma.done.wait [#allocation5], 64  }
 0x53f   :  { %2862 = vsyncadd [#allocation5], 4294967232 }
 0x540   :  { %2041 = vsyncpa [#allocation5], 1 }

</bundles_post_ra>
